<compile_context>
chip_gen: v5e
topology: v5e:2x2
jax: 0.10.0
libtpu: 0.0.40
codegen_flags: <defaults>
</compile_context>

<pallas_src>
from functools import partial

import jax
import jax.numpy as jnp
from jax.experimental import pallas as pl
from jax.experimental.pallas import tpu as pltpu


def _round_up(n, m):
    return (n + m - 1) // m * m


# ----------------------------- fused Pallas kernel ---------------------------

def _make_fused_kernel(T: int, B: int, I: int, H: int, C: int):
    """kernel(x_ref (T*B,I), w_ref (packed), out_ref (T*B,C), hs1_ref scratch)."""
    # Packed-weight row offsets (all multiples of 8 -> tile-aligned slices).
    R_BLK = 0                       # rows 0       .. 2H      : block-diag recurrent RHS
    R_IH0 = 2 * H                   # rows 2H      .. 2H+I    : w_ih0  (cols 0:4H)
    R_FCW = R_IH0 + _round_up(I, 8)  # rows ..      .. +H      : fc_w   (cols 0:C)
    R_B = R_FCW + H                 # row  R_B              : b0 (0:4H) | b1 (4H:8H)
    #                                 row  R_B+1            : fc_b (0:C)

    def kernel(x_ref, w_ref, out_ref, hs1_ref):
        # ---- unpack weights (static, tile-aligned slices of one VMEM buffer).
        w_blk = w_ref[R_BLK:R_BLK + 2 * H, :]            # (2H, 8H)
        w_ih0 = w_ref[R_IH0:R_IH0 + I, 0:4 * H]          # (I, 4H)
        fc_w = w_ref[R_FCW:R_FCW + H, 0:C]               # (H, C)
        b0 = w_ref[R_B:R_B + 1, 0:4 * H]                 # (1, 4H)
        b1 = w_ref[R_B:R_B + 1, 4 * H:8 * H]             # (1, 4H)
        fc_b = w_ref[R_B + 1:R_B + 2, 0:C]               # (1, C)

        # ---- hoisted layer-0 input projection (independent of the recurrence).
        # x is time-major: row t*B + b == logs[b, t, :].
        gx = jnp.dot(x_ref[...], w_ih0,
                     preferred_element_type=jnp.float32) + b0     # (T*B, 4H)

        def cell(g, c):
            # One sigmoid + one tanh over the full 4H-wide gate slab, then
            # slice i/f/g/o (3 EUP pushes per cell instead of 5).
            sg = jax.nn.sigmoid(g)
            tg = jnp.tanh(g)
            i_g = sg[:, 0 * H:1 * H]
            f_g = sg[:, 1 * H:2 * H]
            g_g = tg[:, 2 * H:3 * H]
            o_g = sg[:, 3 * H:4 * H]
            c_new = f_g * c + i_g * g_g
            h_new = o_g * jnp.tanh(c_new)
            return h_new, c_new

        zeros = jnp.zeros((B, H), jnp.float32)
        h0, c0 = zeros, zeros
        h1, c1 = zeros, zeros

        # ---- software-pipelined 2-layer recurrence (statically unrolled).
        # Combined step s: layer-0 timestep s (s < T) and layer-1 timestep s-1
        # (s >= 1).  Both recurrent matmuls ride ONE (B,2H)@(2H,8H) matmul:
        #   mm[:, 0:4H]   = h0_prev @ w_hh0
        #   mm[:, 4H:8H]  = h0_prev @ w_ih1 + h1_prev @ w_hh1
        for s in range(T + 1):
            if s == 0:
                # h0_{-1} = 0, so the recurrent contribution vanishes.
                h0, c0 = cell(gx[0:B, :], c0)
                continue

            mm = jnp.dot(jnp.concatenate([h0, h1], axis=-1), w_blk,
                         preferred_element_type=jnp.float32)      # (B, 8H)

            # layer-1 timestep s-1 (uses the pre-update h0, h1).
            g1 = mm[:, 4 * H:8 * H] + b1
            h1_new, c1 = cell(g1, c1)
            hs1_ref[(s - 1) * B:s * B, :] = h1_new

            # layer-0 timestep s.
            if s < T:
                g0 = gx[s * B:(s + 1) * B, :] + mm[:, 0:4 * H]
                h0, c0 = cell(g0, c0)

            h1 = h1_new

        # ---- FC head over all timesteps at once, single output store.
        out_ref[...] = (jnp.dot(hs1_ref[...], fc_w,
                                preferred_element_type=jnp.float32)
                        + fc_b).astype(out_ref.dtype)

    return kernel


# ----------------------------- weight packing --------------------------------

def pack_params(params):
    """Pack all LSTM + FC weights/biases into one tile-aligned f32 buffer."""
    assert len(params["lstm"]) == 2, "fused pipelined kernel assumes num_layers=2"
    l0, l1 = params["lstm"]
    H = l0["w_hh_t"].shape[0]
    I = l0["w_ih_t"].shape[0]
    C = params["fc_w_t"].shape[1]

    R_IH0 = 2 * H
    R_FCW = R_IH0 + _round_up(I, 8)
    R_B = R_FCW + H
    rows = _round_up(R_B + 2, 8)

    W = jnp.zeros((rows, 8 * H), jnp.float32)
    # Block-diagonal recurrent RHS: [[w_hh0 | w_ih1], [0 | w_hh1]].
    W = W.at[0:H, 0:4 * H].set(l0["w_hh_t"])
    W = W.at[0:H, 4 * H:8 * H].set(l1["w_ih_t"])
    W = W.at[H:2 * H, 4 * H:8 * H].set(l1["w_hh_t"])
    # Layer-0 input projection.
    W = W.at[R_IH0:R_IH0 + I, 0:4 * H].set(l0["w_ih_t"])
    # FC head.
    W = W.at[R_FCW:R_FCW + H, 0:C].set(params["fc_w_t"])
    # Biases.
    W = W.at[R_B:R_B + 1, 0:4 * H].set(l0["b"])
    W = W.at[R_B:R_B + 1, 4 * H:8 * H].set(l1["b"])
    W = W.at[R_B + 1:R_B + 2, 0:C].set(params["fc_b"])
    return W


# --------------------------------- wrapper -----------------------------------

@partial(jax.jit, static_argnames=("num_classes",))
def ad_model_forward(logs_bti, packed_w, num_classes=4):
    """Pallas equivalent of ad_model.forward (unidirectional, dropout=0).

    logs_bti : (B, T, input_size), batch_first like PyTorch.
    packed_w : buffer from pack_params(params).
    returns  : (B, T, num_classes) float32.
    """
    logs_bti = logs_bti.astype(jnp.float32)          # matches logs.float()
    B, T, I = logs_bti.shape
    H = packed_w.shape[1] // 8
    C = num_classes

    # One tiny XLA transpose+reshape -> time-major (T*B, I) slab for the kernel.
    x2 = jnp.transpose(logs_bti, (1, 0, 2)).reshape(T * B, I)

    kernel = _make_fused_kernel(T, B, I, H, C)
    out2 = pl.pallas_call(
        kernel,
        out_shape=jax.ShapeDtypeStruct((T * B, C), jnp.float32),
        in_specs=[
            pl.BlockSpec((T * B, I), lambda: (0, 0)),
            pl.BlockSpec(packed_w.shape, lambda: (0, 0)),
        ],
        out_specs=pl.BlockSpec((T * B, C), lambda: (0, 0)),
        scratch_shapes=[pltpu.VMEM((T * B, H), jnp.float32)],
    )(x2, packed_w)

    # Time-major (T*B, C) -> (B, T, C); tiny wrapper-side relayout.
    return jnp.transpose(out2.reshape(T, B, C), (1, 0, 2))


# --------------------------- parameter construction --------------------------

def init_params(key, input_size, hidden_size, num_layers, num_classes):
    """PyTorch-style uniform(-1/sqrt(H), 1/sqrt(H)) init, deterministic."""
    params = {"lstm": []}
    k = 1.0 / jnp.sqrt(jnp.float32(hidden_size))
    in_sz = input_size
    for _ in range(num_layers):
        key, k1, k2, k3, k4 = jax.random.split(key, 5)
        w_ih = jax.random.uniform(k1, (4 * hidden_size, in_sz), jnp.float32, -k, k)
        w_hh = jax.random.uniform(k2, (4 * hidden_size, hidden_size), jnp.float32, -k, k)
        b_ih = jax.random.uniform(k3, (4 * hidden_size,), jnp.float32, -k, k)
        b_hh = jax.random.uniform(k4, (4 * hidden_size,), jnp.float32, -k, k)
        params["lstm"].append({
            "w_ih_t": w_ih.T,                       # (F, 4H)
            "w_hh_t": w_hh.T,                       # (H, 4H)
            "b": (b_ih + b_hh)[None, :],            # (1, 4H)
        })
        in_sz = hidden_size
    kf = 1.0 / jnp.sqrt(jnp.float32(hidden_size))
    key, k5, k6 = jax.random.split(key, 3)
    fc_w = jax.random.uniform(k5, (num_classes, hidden_size), jnp.float32, -kf, kf)
    fc_b = jax.random.uniform(k6, (num_classes,), jnp.float32, -kf, kf)
    params["fc_w_t"] = fc_w.T                       # (H, C)
    params["fc_b"] = fc_b[None, :]                  # (1, C)
    return params


# ------------------------------ pure-JAX reference ---------------------------

def reference_forward(logs_bti, params):
    x = jnp.transpose(logs_bti.astype(jnp.float32), (1, 0, 2))   # (T, B, I)
    for layer in params["lstm"]:
        w_ih_t, w_hh_t, b = layer["w_ih_t"], layer["w_hh_t"], layer["b"]
        H = w_hh_t.shape[0]
        B = x.shape[1]
        h0 = jnp.zeros((B, H), jnp.float32)
        c0 = jnp.zeros((B, H), jnp.float32)

        def step(carry, x_t):
            h, c = carry
            g = x_t @ w_ih_t + h @ w_hh_t + b
            i = jax.nn.sigmoid(g[:, 0 * H:1 * H])
            f = jax.nn.sigmoid(g[:, 1 * H:2 * H])
            gg = jnp.tanh(g[:, 2 * H:3 * H])
            o = jax.nn.sigmoid(g[:, 3 * H:4 * H])
            c_new = f * c + i * gg
            h_new = o * jnp.tanh(c_new)
            return (h_new, c_new), h_new

        _, x = jax.lax.scan(step, (h0, c0), x)
    out = x @ params["fc_w_t"] + params["fc_b"]                   # (T, B, C)
    return jnp.transpose(out, (1, 0, 2))                          # (B, T, C)


# ------------------------------------ main -----------------------------------

if __name__ == "__main__":
    INPUT_SIZE = 16
    HIDDEN_SIZE = 32
    NUM_LAYERS = 2
    NUM_CLASSES = 4
    BATCH = 2
    SEQ = 8

    key = jax.random.PRNGKey(0)
    key, pkey, xkey = jax.random.split(key, 3)
    params = init_params(pkey, INPUT_SIZE, HIDDEN_SIZE, NUM_LAYERS, NUM_CLASSES)
    packed = pack_params(params)
    logs = jax.random.normal(xkey, (BATCH, SEQ, INPUT_SIZE), jnp.float32)

    out = ad_model_forward(logs, packed, num_classes=NUM_CLASSES)
    out = jax.block_until_ready(out)

    ref = jax.block_until_ready(reference_forward(logs, params))
    assert out.shape == (BATCH, SEQ, NUM_CLASSES), out.shape
    assert jnp.allclose(out, ref, atol=1e-5, rtol=1e-5), "mismatch vs JAX reference"

    print("KERNEL_OK")
</pallas_src>

<mosaic_0001>
module attributes {stable_mosaic.version = 11 : i64} {
  func.func @kernel(%arg0: memref<16x16xf32, #tpu.memory_space<vmem>>, %arg1: memref<120x256xf32, #tpu.memory_space<vmem>>, %arg2: memref<16x4xf32, #tpu.memory_space<vmem>>, %arg3: memref<16x32xf32, #tpu.memory_space<vmem>>) attributes {dimension_semantics = [], scalar_prefetch = 0 : i64, scratch_operands = 1 : i64, tpu.core_type = #tpu.core_type<tc>} {
    %c0 = arith.constant 0 : index
    %c0_0 = arith.constant 0 : index
    %0 = vector.load %arg1[%c0, %c0_0] : memref<120x256xf32, #tpu.memory_space<vmem>>, vector<64x256xf32>
    %c64 = arith.constant 64 : index
    %c0_1 = arith.constant 0 : index
    %1 = vector.load %arg1[%c64, %c0_1] : memref<120x256xf32, #tpu.memory_space<vmem>>, vector<16x128xf32>
    %c80 = arith.constant 80 : index
    %c0_2 = arith.constant 0 : index
    %2 = vector.load %arg1[%c80, %c0_2] : memref<120x256xf32, #tpu.memory_space<vmem>>, vector<32x4xf32>
    %c112 = arith.constant 112 : index
    %c0_3 = arith.constant 0 : index
    %3 = vector.load %arg1[%c112, %c0_3] : memref<120x256xf32, #tpu.memory_space<vmem>>, vector<1x128xf32>
    %c112_4 = arith.constant 112 : index
    %c128 = arith.constant 128 : index
    %4 = vector.load %arg1[%c112_4, %c128] : memref<120x256xf32, #tpu.memory_space<vmem>>, vector<1x128xf32>
    %c113 = arith.constant 113 : index
    %c0_5 = arith.constant 0 : index
    %5 = vector.load %arg1[%c113, %c0_5] : memref<120x256xf32, #tpu.memory_space<vmem>>, vector<1x4xf32>
    %c0_6 = arith.constant 0 : index
    %c0_7 = arith.constant 0 : index
    %6 = vector.load %arg0[%c0_6, %c0_7] : memref<16x16xf32, #tpu.memory_space<vmem>>, vector<16x16xf32>
    %cst = arith.constant dense<0.000000e+00> : vector<16x128xf32>
    %7 = tpu.matmul %6, %1, %cst {dimension_numbers = #tpu.dot_dimension_numbers<[1], [0], [0], [1], [0, 0, 1, 1], [], []>} : vector<16x16xf32>, vector<16x128xf32>, vector<16x128xf32> -> vector<16x128xf32>
    %8 = vector.broadcast %3 : vector<1x128xf32> to vector<16x128xf32>
    %9 = arith.addf %7, %8 : vector<16x128xf32>
    %cst_8 = arith.constant 0.000000e+00 : f32
    %10 = vector.broadcast %cst_8 : f32 to vector<2x32xf32>
    %11 = vector.extract_strided_slice %9 {offsets = [0, 0], sizes = [2, 128], strides = [1, 1]} : vector<16x128xf32> to vector<2x128xf32>
    %12 = arith.negf %11 : vector<2x128xf32>
    %13 = math.exp %12 : vector<2x128xf32>
    %cst_9 = arith.constant 1.000000e+00 : f32
    %14 = vector.broadcast %cst_9 : f32 to vector<2x128xf32>
    %15 = arith.addf %14, %13 : vector<2x128xf32>
    %16 = arith.divf %14, %15 : vector<2x128xf32>
    %17 = math.tanh %11 : vector<2x128xf32>
    %18 = vector.extract_strided_slice %16 {offsets = [0, 0], sizes = [2, 32], strides = [1, 1]} : vector<2x128xf32> to vector<2x32xf32>
    %19 = vector.extract_strided_slice %16 {offsets = [0, 32], sizes = [2, 32], strides = [1, 1]} : vector<2x128xf32> to vector<2x32xf32>
    %20 = vector.extract_strided_slice %17 {offsets = [0, 64], sizes = [2, 32], strides = [1, 1]} : vector<2x128xf32> to vector<2x32xf32>
    %21 = vector.extract_strided_slice %16 {offsets = [0, 96], sizes = [2, 32], strides = [1, 1]} : vector<2x128xf32> to vector<2x32xf32>
    %22 = arith.mulf %19, %10 : vector<2x32xf32>
    %23 = arith.mulf %18, %20 : vector<2x32xf32>
    %24 = arith.addf %22, %23 : vector<2x32xf32>
    %25 = math.tanh %24 : vector<2x32xf32>
    %26 = arith.mulf %21, %25 : vector<2x32xf32>
    %27 = tpu.concatenate %26, %10 in 1 : vector<2x32xf32>, vector<2x32xf32> -> vector<2x64xf32>
    %cst_10 = arith.constant dense<0.000000e+00> : vector<2x256xf32>
    %28 = tpu.matmul %27, %0, %cst_10 {dimension_numbers = #tpu.dot_dimension_numbers<[1], [0], [0], [1], [0, 0, 1, 1], [], []>} : vector<2x64xf32>, vector<64x256xf32>, vector<2x256xf32> -> vector<2x256xf32>
    %29 = vector.extract_strided_slice %28 {offsets = [0, 128], sizes = [2, 128], strides = [1, 1]} : vector<2x256xf32> to vector<2x128xf32>
    %30 = vector.broadcast %4 : vector<1x128xf32> to vector<2x128xf32>
    %31 = arith.addf %29, %30 : vector<2x128xf32>
    %32 = arith.negf %31 : vector<2x128xf32>
    %33 = math.exp %32 : vector<2x128xf32>
    %cst_11 = arith.constant 1.000000e+00 : f32
    %34 = vector.broadcast %cst_11 : f32 to vector<2x128xf32>
    %35 = arith.addf %34, %33 : vector<2x128xf32>
    %36 = arith.divf %34, %35 : vector<2x128xf32>
    %37 = math.tanh %31 : vector<2x128xf32>
    %38 = vector.extract_strided_slice %36 {offsets = [0, 0], sizes = [2, 32], strides = [1, 1]} : vector<2x128xf32> to vector<2x32xf32>
    %39 = vector.extract_strided_slice %36 {offsets = [0, 32], sizes = [2, 32], strides = [1, 1]} : vector<2x128xf32> to vector<2x32xf32>
    %40 = vector.extract_strided_slice %37 {offsets = [0, 64], sizes = [2, 32], strides = [1, 1]} : vector<2x128xf32> to vector<2x32xf32>
    %41 = vector.extract_strided_slice %36 {offsets = [0, 96], sizes = [2, 32], strides = [1, 1]} : vector<2x128xf32> to vector<2x32xf32>
    %42 = arith.mulf %39, %10 : vector<2x32xf32>
    %43 = arith.mulf %38, %40 : vector<2x32xf32>
    %44 = arith.addf %42, %43 : vector<2x32xf32>
    %45 = math.tanh %44 : vector<2x32xf32>
    %46 = arith.mulf %41, %45 : vector<2x32xf32>
    %c0_12 = arith.constant 0 : index
    %c0_13 = arith.constant 0 : index
    %47 = vector.load %arg3[%c0_12, %c0_13] : memref<16x32xf32, #tpu.memory_space<vmem>>, vector<2x32xf32>
    tpu.vector_store %arg3[%c0_12, %c0_13], %46 {strides = array<i32>} : memref<16x32xf32, #tpu.memory_space<vmem>>, vector<2x32xf32>,
    %48 = vector.extract_strided_slice %9 {offsets = [2, 0], sizes = [2, 128], strides = [1, 1]} : vector<16x128xf32> to vector<2x128xf32>
    %49 = vector.extract_strided_slice %28 {offsets = [0, 0], sizes = [2, 128], strides = [1, 1]} : vector<2x256xf32> to vector<2x128xf32>
    %50 = arith.addf %48, %49 : vector<2x128xf32>
    %51 = arith.negf %50 : vector<2x128xf32>
    %52 = math.exp %51 : vector<2x128xf32>
    %cst_14 = arith.constant 1.000000e+00 : f32
    %53 = vector.broadcast %cst_14 : f32 to vector<2x128xf32>
    %54 = arith.addf %53, %52 : vector<2x128xf32>
    %55 = arith.divf %53, %54 : vector<2x128xf32>
    %56 = math.tanh %50 : vector<2x128xf32>
    %57 = vector.extract_strided_slice %55 {offsets = [0, 0], sizes = [2, 32], strides = [1, 1]} : vector<2x128xf32> to vector<2x32xf32>
    %58 = vector.extract_strided_slice %55 {offsets = [0, 32], sizes = [2, 32], strides = [1, 1]} : vector<2x128xf32> to vector<2x32xf32>
    %59 = vector.extract_strided_slice %56 {offsets = [0, 64], sizes = [2, 32], strides = [1, 1]} : vector<2x128xf32> to vector<2x32xf32>
    %60 = vector.extract_strided_slice %55 {offsets = [0, 96], sizes = [2, 32], strides = [1, 1]} : vector<2x128xf32> to vector<2x32xf32>
    %61 = arith.mulf %58, %24 : vector<2x32xf32>
    %62 = arith.mulf %57, %59 : vector<2x32xf32>
    %63 = arith.addf %61, %62 : vector<2x32xf32>
    %64 = math.tanh %63 : vector<2x32xf32>
    %65 = arith.mulf %60, %64 : vector<2x32xf32>
    %66 = tpu.concatenate %65, %46 in 1 : vector<2x32xf32>, vector<2x32xf32> -> vector<2x64xf32>
    %cst_15 = arith.constant dense<0.000000e+00> : vector<2x256xf32>
    %67 = tpu.matmul %66, %0, %cst_15 {dimension_numbers = #tpu.dot_dimension_numbers<[1], [0], [0], [1], [0, 0, 1, 1], [], []>} : vector<2x64xf32>, vector<64x256xf32>, vector<2x256xf32> -> vector<2x256xf32>
    %68 = vector.extract_strided_slice %67 {offsets = [0, 128], sizes = [2, 128], strides = [1, 1]} : vector<2x256xf32> to vector<2x128xf32>
    %69 = vector.broadcast %4 : vector<1x128xf32> to vector<2x128xf32>
    %70 = arith.addf %68, %69 : vector<2x128xf32>
    %71 = arith.negf %70 : vector<2x128xf32>
    %72 = math.exp %71 : vector<2x128xf32>
    %cst_16 = arith.constant 1.000000e+00 : f32
    %73 = vector.broadcast %cst_16 : f32 to vector<2x128xf32>
    %74 = arith.addf %73, %72 : vector<2x128xf32>
    %75 = arith.divf %73, %74 : vector<2x128xf32>
    %76 = math.tanh %70 : vector<2x128xf32>
    %77 = vector.extract_strided_slice %75 {offsets = [0, 0], sizes = [2, 32], strides = [1, 1]} : vector<2x128xf32> to vector<2x32xf32>
    %78 = vector.extract_strided_slice %75 {offsets = [0, 32], sizes = [2, 32], strides = [1, 1]} : vector<2x128xf32> to vector<2x32xf32>
    %79 = vector.extract_strided_slice %76 {offsets = [0, 64], sizes = [2, 32], strides = [1, 1]} : vector<2x128xf32> to vector<2x32xf32>
    %80 = vector.extract_strided_slice %75 {offsets = [0, 96], sizes = [2, 32], strides = [1, 1]} : vector<2x128xf32> to vector<2x32xf32>
    %81 = arith.mulf %78, %44 : vector<2x32xf32>
    %82 = arith.mulf %77, %79 : vector<2x32xf32>
    %83 = arith.addf %81, %82 : vector<2x32xf32>
    %84 = math.tanh %83 : vector<2x32xf32>
    %85 = arith.mulf %80, %84 : vector<2x32xf32>
    %c2 = arith.constant 2 : index
    %c0_17 = arith.constant 0 : index
    %86 = vector.load %arg3[%c2, %c0_17] : memref<16x32xf32, #tpu.memory_space<vmem>>, vector<2x32xf32>
    tpu.vector_store %arg3[%c2, %c0_17], %85 {strides = array<i32>} : memref<16x32xf32, #tpu.memory_space<vmem>>, vector<2x32xf32>,
    %87 = vector.extract_strided_slice %9 {offsets = [4, 0], sizes = [2, 128], strides = [1, 1]} : vector<16x128xf32> to vector<2x128xf32>
    %88 = vector.extract_strided_slice %67 {offsets = [0, 0], sizes = [2, 128], strides = [1, 1]} : vector<2x256xf32> to vector<2x128xf32>
    %89 = arith.addf %87, %88 : vector<2x128xf32>
    %90 = arith.negf %89 : vector<2x128xf32>
    %91 = math.exp %90 : vector<2x128xf32>
    %cst_18 = arith.constant 1.000000e+00 : f32
    %92 = vector.broadcast %cst_18 : f32 to vector<2x128xf32>
    %93 = arith.addf %92, %91 : vector<2x128xf32>
    %94 = arith.divf %92, %93 : vector<2x128xf32>
    %95 = math.tanh %89 : vector<2x128xf32>
    %96 = vector.extract_strided_slice %94 {offsets = [0, 0], sizes = [2, 32], strides = [1, 1]} : vector<2x128xf32> to vector<2x32xf32>
    %97 = vector.extract_strided_slice %94 {offsets = [0, 32], sizes = [2, 32], strides = [1, 1]} : vector<2x128xf32> to vector<2x32xf32>
    %98 = vector.extract_strided_slice %95 {offsets = [0, 64], sizes = [2, 32], strides = [1, 1]} : vector<2x128xf32> to vector<2x32xf32>
    %99 = vector.extract_strided_slice %94 {offsets = [0, 96], sizes = [2, 32], strides = [1, 1]} : vector<2x128xf32> to vector<2x32xf32>
    %100 = arith.mulf %97, %63 : vector<2x32xf32>
    %101 = arith.mulf %96, %98 : vector<2x32xf32>
    %102 = arith.addf %100, %101 : vector<2x32xf32>
    %103 = math.tanh %102 : vector<2x32xf32>
    %104 = arith.mulf %99, %103 : vector<2x32xf32>
    %105 = tpu.concatenate %104, %85 in 1 : vector<2x32xf32>, vector<2x32xf32> -> vector<2x64xf32>
    %cst_19 = arith.constant dense<0.000000e+00> : vector<2x256xf32>
    %106 = tpu.matmul %105, %0, %cst_19 {dimension_numbers = #tpu.dot_dimension_numbers<[1], [0], [0], [1], [0, 0, 1, 1], [], []>} : vector<2x64xf32>, vector<64x256xf32>, vector<2x256xf32> -> vector<2x256xf32>
    %107 = vector.extract_strided_slice %106 {offsets = [0, 128], sizes = [2, 128], strides = [1, 1]} : vector<2x256xf32> to vector<2x128xf32>
    %108 = vector.broadcast %4 : vector<1x128xf32> to vector<2x128xf32>
    %109 = arith.addf %107, %108 : vector<2x128xf32>
    %110 = arith.negf %109 : vector<2x128xf32>
    %111 = math.exp %110 : vector<2x128xf32>
    %cst_20 = arith.constant 1.000000e+00 : f32
    %112 = vector.broadcast %cst_20 : f32 to vector<2x128xf32>
    %113 = arith.addf %112, %111 : vector<2x128xf32>
    %114 = arith.divf %112, %113 : vector<2x128xf32>
    %115 = math.tanh %109 : vector<2x128xf32>
    %116 = vector.extract_strided_slice %114 {offsets = [0, 0], sizes = [2, 32], strides = [1, 1]} : vector<2x128xf32> to vector<2x32xf32>
    %117 = vector.extract_strided_slice %114 {offsets = [0, 32], sizes = [2, 32], strides = [1, 1]} : vector<2x128xf32> to vector<2x32xf32>
    %118 = vector.extract_strided_slice %115 {offsets = [0, 64], sizes = [2, 32], strides = [1, 1]} : vector<2x128xf32> to vector<2x32xf32>
    %119 = vector.extract_strided_slice %114 {offsets = [0, 96], sizes = [2, 32], strides = [1, 1]} : vector<2x128xf32> to vector<2x32xf32>
    %120 = arith.mulf %117, %83 : vector<2x32xf32>
    %121 = arith.mulf %116, %118 : vector<2x32xf32>
    %122 = arith.addf %120, %121 : vector<2x32xf32>
    %123 = math.tanh %122 : vector<2x32xf32>
    %124 = arith.mulf %119, %123 : vector<2x32xf32>
    %c4 = arith.constant 4 : index
    %c0_21 = arith.constant 0 : index
    %125 = vector.load %arg3[%c4, %c0_21] : memref<16x32xf32, #tpu.memory_space<vmem>>, vector<2x32xf32>
    tpu.vector_store %arg3[%c4, %c0_21], %124 {strides = array<i32>} : memref<16x32xf32, #tpu.memory_space<vmem>>, vector<2x32xf32>,
    %126 = vector.extract_strided_slice %9 {offsets = [6, 0], sizes = [2, 128], strides = [1, 1]} : vector<16x128xf32> to vector<2x128xf32>
    %127 = vector.extract_strided_slice %106 {offsets = [0, 0], sizes = [2, 128], strides = [1, 1]} : vector<2x256xf32> to vector<2x128xf32>
    %128 = arith.addf %126, %127 : vector<2x128xf32>
    %129 = arith.negf %128 : vector<2x128xf32>
    %130 = math.exp %129 : vector<2x128xf32>
    %cst_22 = arith.constant 1.000000e+00 : f32
    %131 = vector.broadcast %cst_22 : f32 to vector<2x128xf32>
    %132 = arith.addf %131, %130 : vector<2x128xf32>
    %133 = arith.divf %131, %132 : vector<2x128xf32>
    %134 = math.tanh %128 : vector<2x128xf32>
    %135 = vector.extract_strided_slice %133 {offsets = [0, 0], sizes = [2, 32], strides = [1, 1]} : vector<2x128xf32> to vector<2x32xf32>
    %136 = vector.extract_strided_slice %133 {offsets = [0, 32], sizes = [2, 32], strides = [1, 1]} : vector<2x128xf32> to vector<2x32xf32>
    %137 = vector.extract_strided_slice %134 {offsets = [0, 64], sizes = [2, 32], strides = [1, 1]} : vector<2x128xf32> to vector<2x32xf32>
    %138 = vector.extract_strided_slice %133 {offsets = [0, 96], sizes = [2, 32], strides = [1, 1]} : vector<2x128xf32> to vector<2x32xf32>
    %139 = arith.mulf %136, %102 : vector<2x32xf32>
    %140 = arith.mulf %135, %137 : vector<2x32xf32>
    %141 = arith.addf %139, %140 : vector<2x32xf32>
    %142 = math.tanh %141 : vector<2x32xf32>
    %143 = arith.mulf %138, %142 : vector<2x32xf32>
    %144 = tpu.concatenate %143, %124 in 1 : vector<2x32xf32>, vector<2x32xf32> -> vector<2x64xf32>
    %cst_23 = arith.constant dense<0.000000e+00> : vector<2x256xf32>
    %145 = tpu.matmul %144, %0, %cst_23 {dimension_numbers = #tpu.dot_dimension_numbers<[1], [0], [0], [1], [0, 0, 1, 1], [], []>} : vector<2x64xf32>, vector<64x256xf32>, vector<2x256xf32> -> vector<2x256xf32>
    %146 = vector.extract_strided_slice %145 {offsets = [0, 128], sizes = [2, 128], strides = [1, 1]} : vector<2x256xf32> to vector<2x128xf32>
    %147 = vector.broadcast %4 : vector<1x128xf32> to vector<2x128xf32>
    %148 = arith.addf %146, %147 : vector<2x128xf32>
    %149 = arith.negf %148 : vector<2x128xf32>
    %150 = math.exp %149 : vector<2x128xf32>
    %cst_24 = arith.constant 1.000000e+00 : f32
    %151 = vector.broadcast %cst_24 : f32 to vector<2x128xf32>
    %152 = arith.addf %151, %150 : vector<2x128xf32>
    %153 = arith.divf %151, %152 : vector<2x128xf32>
    %154 = math.tanh %148 : vector<2x128xf32>
    %155 = vector.extract_strided_slice %153 {offsets = [0, 0], sizes = [2, 32], strides = [1, 1]} : vector<2x128xf32> to vector<2x32xf32>
    %156 = vector.extract_strided_slice %153 {offsets = [0, 32], sizes = [2, 32], strides = [1, 1]} : vector<2x128xf32> to vector<2x32xf32>
    %157 = vector.extract_strided_slice %154 {offsets = [0, 64], sizes = [2, 32], strides = [1, 1]} : vector<2x128xf32> to vector<2x32xf32>
    %158 = vector.extract_strided_slice %153 {offsets = [0, 96], sizes = [2, 32], strides = [1, 1]} : vector<2x128xf32> to vector<2x32xf32>
    %159 = arith.mulf %156, %122 : vector<2x32xf32>
    %160 = arith.mulf %155, %157 : vector<2x32xf32>
    %161 = arith.addf %159, %160 : vector<2x32xf32>
    %162 = math.tanh %161 : vector<2x32xf32>
    %163 = arith.mulf %158, %162 : vector<2x32xf32>
    %c6 = arith.constant 6 : index
    %c0_25 = arith.constant 0 : index
    %164 = vector.load %arg3[%c6, %c0_25] : memref<16x32xf32, #tpu.memory_space<vmem>>, vector<2x32xf32>
    tpu.vector_store %arg3[%c6, %c0_25], %163 {strides = array<i32>} : memref<16x32xf32, #tpu.memory_space<vmem>>, vector<2x32xf32>,
    %165 = vector.extract_strided_slice %9 {offsets = [8, 0], sizes = [2, 128], strides = [1, 1]} : vector<16x128xf32> to vector<2x128xf32>
    %166 = vector.extract_strided_slice %145 {offsets = [0, 0], sizes = [2, 128], strides = [1, 1]} : vector<2x256xf32> to vector<2x128xf32>
    %167 = arith.addf %165, %166 : vector<2x128xf32>
    %168 = arith.negf %167 : vector<2x128xf32>
    %169 = math.exp %168 : vector<2x128xf32>
    %cst_26 = arith.constant 1.000000e+00 : f32
    %170 = vector.broadcast %cst_26 : f32 to vector<2x128xf32>
    %171 = arith.addf %170, %169 : vector<2x128xf32>
    %172 = arith.divf %170, %171 : vector<2x128xf32>
    %173 = math.tanh %167 : vector<2x128xf32>
    %174 = vector.extract_strided_slice %172 {offsets = [0, 0], sizes = [2, 32], strides = [1, 1]} : vector<2x128xf32> to vector<2x32xf32>
    %175 = vector.extract_strided_slice %172 {offsets = [0, 32], sizes = [2, 32], strides = [1, 1]} : vector<2x128xf32> to vector<2x32xf32>
    %176 = vector.extract_strided_slice %173 {offsets = [0, 64], sizes = [2, 32], strides = [1, 1]} : vector<2x128xf32> to vector<2x32xf32>
    %177 = vector.extract_strided_slice %172 {offsets = [0, 96], sizes = [2, 32], strides = [1, 1]} : vector<2x128xf32> to vector<2x32xf32>
    %178 = arith.mulf %175, %141 : vector<2x32xf32>
    %179 = arith.mulf %174, %176 : vector<2x32xf32>
    %180 = arith.addf %178, %179 : vector<2x32xf32>
    %181 = math.tanh %180 : vector<2x32xf32>
    %182 = arith.mulf %177, %181 : vector<2x32xf32>
    %183 = tpu.concatenate %182, %163 in 1 : vector<2x32xf32>, vector<2x32xf32> -> vector<2x64xf32>
    %cst_27 = arith.constant dense<0.000000e+00> : vector<2x256xf32>
    %184 = tpu.matmul %183, %0, %cst_27 {dimension_numbers = #tpu.dot_dimension_numbers<[1], [0], [0], [1], [0, 0, 1, 1], [], []>} : vector<2x64xf32>, vector<64x256xf32>, vector<2x256xf32> -> vector<2x256xf32>
    %185 = vector.extract_strided_slice %184 {offsets = [0, 128], sizes = [2, 128], strides = [1, 1]} : vector<2x256xf32> to vector<2x128xf32>
    %186 = vector.broadcast %4 : vector<1x128xf32> to vector<2x128xf32>
    %187 = arith.addf %185, %186 : vector<2x128xf32>
    %188 = arith.negf %187 : vector<2x128xf32>
    %189 = math.exp %188 : vector<2x128xf32>
    %cst_28 = arith.constant 1.000000e+00 : f32
    %190 = vector.broadcast %cst_28 : f32 to vector<2x128xf32>
    %191 = arith.addf %190, %189 : vector<2x128xf32>
    %192 = arith.divf %190, %191 : vector<2x128xf32>
    %193 = math.tanh %187 : vector<2x128xf32>
    %194 = vector.extract_strided_slice %192 {offsets = [0, 0], sizes = [2, 32], strides = [1, 1]} : vector<2x128xf32> to vector<2x32xf32>
    %195 = vector.extract_strided_slice %192 {offsets = [0, 32], sizes = [2, 32], strides = [1, 1]} : vector<2x128xf32> to vector<2x32xf32>
    %196 = vector.extract_strided_slice %193 {offsets = [0, 64], sizes = [2, 32], strides = [1, 1]} : vector<2x128xf32> to vector<2x32xf32>
    %197 = vector.extract_strided_slice %192 {offsets = [0, 96], sizes = [2, 32], strides = [1, 1]} : vector<2x128xf32> to vector<2x32xf32>
    %198 = arith.mulf %195, %161 : vector<2x32xf32>
    %199 = arith.mulf %194, %196 : vector<2x32xf32>
    %200 = arith.addf %198, %199 : vector<2x32xf32>
    %201 = math.tanh %200 : vector<2x32xf32>
    %202 = arith.mulf %197, %201 : vector<2x32xf32>
    %c8 = arith.constant 8 : index
    %c0_29 = arith.constant 0 : index
    %203 = vector.load %arg3[%c8, %c0_29] : memref<16x32xf32, #tpu.memory_space<vmem>>, vector<2x32xf32>
    tpu.vector_store %arg3[%c8, %c0_29], %202 {strides = array<i32>} : memref<16x32xf32, #tpu.memory_space<vmem>>, vector<2x32xf32>,
    %204 = vector.extract_strided_slice %9 {offsets = [10, 0], sizes = [2, 128], strides = [1, 1]} : vector<16x128xf32> to vector<2x128xf32>
    %205 = vector.extract_strided_slice %184 {offsets = [0, 0], sizes = [2, 128], strides = [1, 1]} : vector<2x256xf32> to vector<2x128xf32>
    %206 = arith.addf %204, %205 : vector<2x128xf32>
    %207 = arith.negf %206 : vector<2x128xf32>
    %208 = math.exp %207 : vector<2x128xf32>
    %cst_30 = arith.constant 1.000000e+00 : f32
    %209 = vector.broadcast %cst_30 : f32 to vector<2x128xf32>
    %210 = arith.addf %209, %208 : vector<2x128xf32>
    %211 = arith.divf %209, %210 : vector<2x128xf32>
    %212 = math.tanh %206 : vector<2x128xf32>
    %213 = vector.extract_strided_slice %211 {offsets = [0, 0], sizes = [2, 32], strides = [1, 1]} : vector<2x128xf32> to vector<2x32xf32>
    %214 = vector.extract_strided_slice %211 {offsets = [0, 32], sizes = [2, 32], strides = [1, 1]} : vector<2x128xf32> to vector<2x32xf32>
    %215 = vector.extract_strided_slice %212 {offsets = [0, 64], sizes = [2, 32], strides = [1, 1]} : vector<2x128xf32> to vector<2x32xf32>
    %216 = vector.extract_strided_slice %211 {offsets = [0, 96], sizes = [2, 32], strides = [1, 1]} : vector<2x128xf32> to vector<2x32xf32>
    %217 = arith.mulf %214, %180 : vector<2x32xf32>
    %218 = arith.mulf %213, %215 : vector<2x32xf32>
    %219 = arith.addf %217, %218 : vector<2x32xf32>
    %220 = math.tanh %219 : vector<2x32xf32>
    %221 = arith.mulf %216, %220 : vector<2x32xf32>
    %222 = tpu.concatenate %221, %202 in 1 : vector<2x32xf32>, vector<2x32xf32> -> vector<2x64xf32>
    %cst_31 = arith.constant dense<0.000000e+00> : vector<2x256xf32>
    %223 = tpu.matmul %222, %0, %cst_31 {dimension_numbers = #tpu.dot_dimension_numbers<[1], [0], [0], [1], [0, 0, 1, 1], [], []>} : vector<2x64xf32>, vector<64x256xf32>, vector<2x256xf32> -> vector<2x256xf32>
    %224 = vector.extract_strided_slice %223 {offsets = [0, 128], sizes = [2, 128], strides = [1, 1]} : vector<2x256xf32> to vector<2x128xf32>
    %225 = vector.broadcast %4 : vector<1x128xf32> to vector<2x128xf32>
    %226 = arith.addf %224, %225 : vector<2x128xf32>
    %227 = arith.negf %226 : vector<2x128xf32>
    %228 = math.exp %227 : vector<2x128xf32>
    %cst_32 = arith.constant 1.000000e+00 : f32
    %229 = vector.broadcast %cst_32 : f32 to vector<2x128xf32>
    %230 = arith.addf %229, %228 : vector<2x128xf32>
    %231 = arith.divf %229, %230 : vector<2x128xf32>
    %232 = math.tanh %226 : vector<2x128xf32>
    %233 = vector.extract_strided_slice %231 {offsets = [0, 0], sizes = [2, 32], strides = [1, 1]} : vector<2x128xf32> to vector<2x32xf32>
    %234 = vector.extract_strided_slice %231 {offsets = [0, 32], sizes = [2, 32], strides = [1, 1]} : vector<2x128xf32> to vector<2x32xf32>
    %235 = vector.extract_strided_slice %232 {offsets = [0, 64], sizes = [2, 32], strides = [1, 1]} : vector<2x128xf32> to vector<2x32xf32>
    %236 = vector.extract_strided_slice %231 {offsets = [0, 96], sizes = [2, 32], strides = [1, 1]} : vector<2x128xf32> to vector<2x32xf32>
    %237 = arith.mulf %234, %200 : vector<2x32xf32>
    %238 = arith.mulf %233, %235 : vector<2x32xf32>
    %239 = arith.addf %237, %238 : vector<2x32xf32>
    %240 = math.tanh %239 : vector<2x32xf32>
    %241 = arith.mulf %236, %240 : vector<2x32xf32>
    %c10 = arith.constant 10 : index
    %c0_33 = arith.constant 0 : index
    %242 = vector.load %arg3[%c10, %c0_33] : memref<16x32xf32, #tpu.memory_space<vmem>>, vector<2x32xf32>
    tpu.vector_store %arg3[%c10, %c0_33], %241 {strides = array<i32>} : memref<16x32xf32, #tpu.memory_space<vmem>>, vector<2x32xf32>,
    %243 = vector.extract_strided_slice %9 {offsets = [12, 0], sizes = [2, 128], strides = [1, 1]} : vector<16x128xf32> to vector<2x128xf32>
    %244 = vector.extract_strided_slice %223 {offsets = [0, 0], sizes = [2, 128], strides = [1, 1]} : vector<2x256xf32> to vector<2x128xf32>
    %245 = arith.addf %243, %244 : vector<2x128xf32>
    %246 = arith.negf %245 : vector<2x128xf32>
    %247 = math.exp %246 : vector<2x128xf32>
    %cst_34 = arith.constant 1.000000e+00 : f32
    %248 = vector.broadcast %cst_34 : f32 to vector<2x128xf32>
    %249 = arith.addf %248, %247 : vector<2x128xf32>
    %250 = arith.divf %248, %249 : vector<2x128xf32>
    %251 = math.tanh %245 : vector<2x128xf32>
    %252 = vector.extract_strided_slice %250 {offsets = [0, 0], sizes = [2, 32], strides = [1, 1]} : vector<2x128xf32> to vector<2x32xf32>
    %253 = vector.extract_strided_slice %250 {offsets = [0, 32], sizes = [2, 32], strides = [1, 1]} : vector<2x128xf32> to vector<2x32xf32>
    %254 = vector.extract_strided_slice %251 {offsets = [0, 64], sizes = [2, 32], strides = [1, 1]} : vector<2x128xf32> to vector<2x32xf32>
    %255 = vector.extract_strided_slice %250 {offsets = [0, 96], sizes = [2, 32], strides = [1, 1]} : vector<2x128xf32> to vector<2x32xf32>
    %256 = arith.mulf %253, %219 : vector<2x32xf32>
    %257 = arith.mulf %252, %254 : vector<2x32xf32>
    %258 = arith.addf %256, %257 : vector<2x32xf32>
    %259 = math.tanh %258 : vector<2x32xf32>
    %260 = arith.mulf %255, %259 : vector<2x32xf32>
    %261 = tpu.concatenate %260, %241 in 1 : vector<2x32xf32>, vector<2x32xf32> -> vector<2x64xf32>
    %cst_35 = arith.constant dense<0.000000e+00> : vector<2x256xf32>
    %262 = tpu.matmul %261, %0, %cst_35 {dimension_numbers = #tpu.dot_dimension_numbers<[1], [0], [0], [1], [0, 0, 1, 1], [], []>} : vector<2x64xf32>, vector<64x256xf32>, vector<2x256xf32> -> vector<2x256xf32>
    %263 = vector.extract_strided_slice %262 {offsets = [0, 128], sizes = [2, 128], strides = [1, 1]} : vector<2x256xf32> to vector<2x128xf32>
    %264 = vector.broadcast %4 : vector<1x128xf32> to vector<2x128xf32>
    %265 = arith.addf %263, %264 : vector<2x128xf32>
    %266 = arith.negf %265 : vector<2x128xf32>
    %267 = math.exp %266 : vector<2x128xf32>
    %cst_36 = arith.constant 1.000000e+00 : f32
    %268 = vector.broadcast %cst_36 : f32 to vector<2x128xf32>
    %269 = arith.addf %268, %267 : vector<2x128xf32>
    %270 = arith.divf %268, %269 : vector<2x128xf32>
    %271 = math.tanh %265 : vector<2x128xf32>
    %272 = vector.extract_strided_slice %270 {offsets = [0, 0], sizes = [2, 32], strides = [1, 1]} : vector<2x128xf32> to vector<2x32xf32>
    %273 = vector.extract_strided_slice %270 {offsets = [0, 32], sizes = [2, 32], strides = [1, 1]} : vector<2x128xf32> to vector<2x32xf32>
    %274 = vector.extract_strided_slice %271 {offsets = [0, 64], sizes = [2, 32], strides = [1, 1]} : vector<2x128xf32> to vector<2x32xf32>
    %275 = vector.extract_strided_slice %270 {offsets = [0, 96], sizes = [2, 32], strides = [1, 1]} : vector<2x128xf32> to vector<2x32xf32>
    %276 = arith.mulf %273, %239 : vector<2x32xf32>
    %277 = arith.mulf %272, %274 : vector<2x32xf32>
    %278 = arith.addf %276, %277 : vector<2x32xf32>
    %279 = math.tanh %278 : vector<2x32xf32>
    %280 = arith.mulf %275, %279 : vector<2x32xf32>
    %c12 = arith.constant 12 : index
    %c0_37 = arith.constant 0 : index
    %281 = vector.load %arg3[%c12, %c0_37] : memref<16x32xf32, #tpu.memory_space<vmem>>, vector<2x32xf32>
    tpu.vector_store %arg3[%c12, %c0_37], %280 {strides = array<i32>} : memref<16x32xf32, #tpu.memory_space<vmem>>, vector<2x32xf32>,
    %282 = vector.extract_strided_slice %9 {offsets = [14, 0], sizes = [2, 128], strides = [1, 1]} : vector<16x128xf32> to vector<2x128xf32>
    %283 = vector.extract_strided_slice %262 {offsets = [0, 0], sizes = [2, 128], strides = [1, 1]} : vector<2x256xf32> to vector<2x128xf32>
    %284 = arith.addf %282, %283 : vector<2x128xf32>
    %285 = arith.negf %284 : vector<2x128xf32>
    %286 = math.exp %285 : vector<2x128xf32>
    %cst_38 = arith.constant 1.000000e+00 : f32
    %287 = vector.broadcast %cst_38 : f32 to vector<2x128xf32>
    %288 = arith.addf %287, %286 : vector<2x128xf32>
    %289 = arith.divf %287, %288 : vector<2x128xf32>
    %290 = math.tanh %284 : vector<2x128xf32>
    %291 = vector.extract_strided_slice %289 {offsets = [0, 0], sizes = [2, 32], strides = [1, 1]} : vector<2x128xf32> to vector<2x32xf32>
    %292 = vector.extract_strided_slice %289 {offsets = [0, 32], sizes = [2, 32], strides = [1, 1]} : vector<2x128xf32> to vector<2x32xf32>
    %293 = vector.extract_strided_slice %290 {offsets = [0, 64], sizes = [2, 32], strides = [1, 1]} : vector<2x128xf32> to vector<2x32xf32>
    %294 = vector.extract_strided_slice %289 {offsets = [0, 96], sizes = [2, 32], strides = [1, 1]} : vector<2x128xf32> to vector<2x32xf32>
    %295 = arith.mulf %292, %258 : vector<2x32xf32>
    %296 = arith.mulf %291, %293 : vector<2x32xf32>
    %297 = arith.addf %295, %296 : vector<2x32xf32>
    %298 = math.tanh %297 : vector<2x32xf32>
    %299 = arith.mulf %294, %298 : vector<2x32xf32>
    %300 = tpu.concatenate %299, %280 in 1 : vector<2x32xf32>, vector<2x32xf32> -> vector<2x64xf32>
    %cst_39 = arith.constant dense<0.000000e+00> : vector<2x256xf32>
    %301 = tpu.matmul %300, %0, %cst_39 {dimension_numbers = #tpu.dot_dimension_numbers<[1], [0], [0], [1], [0, 0, 1, 1], [], []>} : vector<2x64xf32>, vector<64x256xf32>, vector<2x256xf32> -> vector<2x256xf32>
    %302 = vector.extract_strided_slice %301 {offsets = [0, 128], sizes = [2, 128], strides = [1, 1]} : vector<2x256xf32> to vector<2x128xf32>
    %303 = vector.broadcast %4 : vector<1x128xf32> to vector<2x128xf32>
    %304 = arith.addf %302, %303 : vector<2x128xf32>
    %305 = arith.negf %304 : vector<2x128xf32>
    %306 = math.exp %305 : vector<2x128xf32>
    %cst_40 = arith.constant 1.000000e+00 : f32
    %307 = vector.broadcast %cst_40 : f32 to vector<2x128xf32>
    %308 = arith.addf %307, %306 : vector<2x128xf32>
    %309 = arith.divf %307, %308 : vector<2x128xf32>
    %310 = math.tanh %304 : vector<2x128xf32>
    %311 = vector.extract_strided_slice %309 {offsets = [0, 0], sizes = [2, 32], strides = [1, 1]} : vector<2x128xf32> to vector<2x32xf32>
    %312 = vector.extract_strided_slice %309 {offsets = [0, 32], sizes = [2, 32], strides = [1, 1]} : vector<2x128xf32> to vector<2x32xf32>
    %313 = vector.extract_strided_slice %310 {offsets = [0, 64], sizes = [2, 32], strides = [1, 1]} : vector<2x128xf32> to vector<2x32xf32>
    %314 = vector.extract_strided_slice %309 {offsets = [0, 96], sizes = [2, 32], strides = [1, 1]} : vector<2x128xf32> to vector<2x32xf32>
    %315 = arith.mulf %312, %278 : vector<2x32xf32>
    %316 = arith.mulf %311, %313 : vector<2x32xf32>
    %317 = arith.addf %315, %316 : vector<2x32xf32>
    %318 = math.tanh %317 : vector<2x32xf32>
    %319 = arith.mulf %314, %318 : vector<2x32xf32>
    %c14 = arith.constant 14 : index
    %c0_41 = arith.constant 0 : index
    %320 = vector.load %arg3[%c14, %c0_41] : memref<16x32xf32, #tpu.memory_space<vmem>>, vector<2x32xf32>
    tpu.vector_store %arg3[%c14, %c0_41], %319 {strides = array<i32>} : memref<16x32xf32, #tpu.memory_space<vmem>>, vector<2x32xf32>,
    %c0_42 = arith.constant 0 : index
    %c0_43 = arith.constant 0 : index
    %321 = vector.load %arg3[%c0_42, %c0_43] : memref<16x32xf32, #tpu.memory_space<vmem>>, vector<16x32xf32>
    %cst_44 = arith.constant dense<0.000000e+00> : vector<16x4xf32>
    %322 = tpu.matmul %321, %2, %cst_44 {dimension_numbers = #tpu.dot_dimension_numbers<[1], [0], [0], [1], [0, 0, 1, 1], [], []>} : vector<16x32xf32>, vector<32x4xf32>, vector<16x4xf32> -> vector<16x4xf32>
    %323 = vector.broadcast %5 : vector<1x4xf32> to vector<16x4xf32>
    %324 = arith.addf %322, %323 : vector<16x4xf32>
    %c0_45 = arith.constant 0 : index
    %c0_46 = arith.constant 0 : index
    %325 = vector.load %arg2[%c0_45, %c0_46] : memref<16x4xf32, #tpu.memory_space<vmem>>, vector<16x4xf32>
    tpu.vector_store %arg2[%c0_45, %c0_46], %324 {strides = array<i32>} : memref<16x4xf32, #tpu.memory_space<vmem>>, vector<16x4xf32>,
    return
  }
}

</mosaic_0001>

<bundles_post_ra>
// kernel: ad_model_forward.1
= control target key start
LH: loop header
LB: loop body
LE: loop exit
PB: predicated region body
PF: predicated region fallthrough
CT: control target
= control target key end

     0   :  { %7 = vsyncpa [#allocation4], 0  ;;  %s1404_s12 = smov [#allocation3]   ;;  %s1405_s14 = smov 256   ;;  %s1805_s0 = inlined_call_operand.vmem [shape: f32[16,16], index: 0, kind: input, shape index: {}]   ;;  %s1806_s1 = inlined_call_operand.hbm [shape: f32[120,256], index: 1, kind: input, shape index: {}]   ;;  %s1807_s2 = inlined_call_operand.vmem [shape: f32[16,4], index: 2, kind: output, shape index: {}]  }
   0x1   :  { %s14_s11 = sshll.u32 %s1806_s1, 4  ;;  %s16_s13 = sshll.u32 %s1404_s12, 4  ;;  %s15_s11 = int_to_ptr.hbm [resolvable:$true] %s14_s11  ;;  %s17_s13 = int_to_ptr.vmem [resolvable:$true] %s16_s13 }
   0x2   :  { %s1406_s15 = smov 16  }
   0x3   :  { %22 = dma.hbm_to_vmem [thread:$0]  %s15_s11, 3840, %s17_s13, [#allocation4], %s1405_s14, %s1405_s14, %s1406_s15  }
   0x4   :  { %1402 = dma.done.wait [#allocation4], 3840  }
   0x5   :  { %1403 = vsyncadd [#allocation4], 4294963456  ;;  %v44_v0 = vld [vmem:[#allocation3 + $0x90] sm:$0xff]  ;;  %v43_v1 = vld [vmem:[#allocation3 + $0x80] sm:$0xff]  ;;  %vm54_vm0 = vcmask 130048   ;;  %s1407_s1 = smov 64  }
   0x6   :  { %75 = vmatpush.msra.mxu0 %v44_v0  ;;  %v52_v2 = vld [vmem:[%s1805_s0] sm:$0xff]  ;;  %v1431_v3 = vld [vmem:[#allocation3 + $0xe0] ss:$0 sm:$0xff]  ;;  %s1408_s18 = smov 32   ;;  %v1446_v27 = vld [vmem:[#allocation3 + $0x78] sm:$0xff]  ;;  %vm125_vm5 = vcmask 261120  }
   0x7   :  { %v1444_v26 = vld [vmem:[#allocation3 + $0x70] sm:$0xff]  ;;  %v1448_v28 = vld [vmem:[#allocation3 + $0x60] sm:$0xff]  ;;  %159 = vmatpush.msra.mxu2 %v1446_v27  ;;  %v1452_v29 = vld [vmem:[#allocation3 + $0x68] sm:$0xff]  ;;  %vm127_vm6 = vcmask 523264  }
   0x8   :  { %76 = vmatpush.msra.mxu0 %v43_v1  ;;  %139 = vmatpush.msra.mxu1 %v1444_v26  ;;  %v1454_v30 = vld [vmem:[#allocation3 + $0x50] sm:$0xff]  ;;  %v1456_v31 = vld [vmem:[#allocation3 + $0x58] sm:$0xff]  ;;  %v1462_v32 = vld [vmem:[#allocation3 + $0x40] sm:$0xff] }
   0x9   :  { %1209 = vmatmul.msk.f32.vlgmr.msra.gmra.mxu0 %vm54_vm0, %v52_v2  ;;  %280 = vmatpush.msra.mxu3 %v1444_v26  ;;  %v1464_v33 = vld [vmem:[#allocation3 + $0x48] sm:$0xff]  ;;  %v1470_v34 = vld [vmem:[#allocation3 + $0x30] sm:$0xff]  ;;  %v1472_v35 = vld [vmem:[#allocation3 + $0x38] sm:$0xff] }
   0xa   :  { %300 = vmatpush.msrb.mxu0 %v1446_v27  ;;  %140 = vmatpush.msra.mxu1 %v1448_v28  ;;  %v1478_v36 = vld [vmem:[#allocation3 + $0x20] sm:$0xff]  ;;  %v1480_v37 = vld [vmem:[#allocation3 + $0x28] sm:$0xff]  ;;  %v1486_v38 = vld [vmem:[#allocation3 + $0x10] sm:$0xff] }
   0xb   :  { %160 = vmatpush.msra.mxu2 %v1452_v29  ;;  %281 = vmatpush.msra.mxu3 %v1448_v28  ;;  %v1488_v39 = vld [vmem:[#allocation3 + $0x18] sm:$0xff]  ;;  %v1501_v42 = vld [vmem:[#allocation3] sm:$0xff]  ;;  %v1503_v43 = vld [vmem:[#allocation3 + $0x8] sm:$0xff] }
   0xc   :  { %301 = vmatpush.msrb.mxu0 %v1452_v29  ;;  %141 = vmatpush.msra.mxu1 %v1454_v30  ;;  %v1560_v46 = vld [vmem:[#allocation3 + $0xe8] ss:$0 sm:$0xff] }
   0xd   :  { %161 = vmatpush.msra.mxu2 %v1456_v31  ;;  %282 = vmatpush.msra.mxu3 %v1454_v30 }
   0xe   :  { %302 = vmatpush.msrb.mxu0 %v1456_v31  ;;  %142 = vmatpush.msra.mxu1 %v1462_v32 }
   0xf   :  { %162 = vmatpush.msra.mxu2 %v1464_v33  ;;  %283 = vmatpush.msra.mxu3 %v1462_v32 }
  0x10   :  { %303 = vmatpush.msrb.mxu0 %v1464_v33  ;;  %143 = vmatpush.msra.mxu1 %v1470_v34 }
  0x11   :  { %163 = vmatpush.msra.mxu2 %v1472_v35  ;;  %284 = vmatpush.msra.mxu3 %v1470_v34 }
  0x12   :  { %304 = vmatpush.msrb.mxu0 %v1472_v35  ;;  %144 = vmatpush.msra.mxu1 %v1478_v36 }
  0x13   :  { %164 = vmatpush.msra.mxu2 %v1480_v37  ;;  %285 = vmatpush.msra.mxu3 %v1478_v36 }
  0x14   :  { %305 = vmatpush.msrb.mxu0 %v1480_v37  ;;  %145 = vmatpush.msra.mxu1 %v1486_v38 }
  0x15   :  { %165 = vmatpush.msra.mxu2 %v1488_v39  ;;  %286 = vmatpush.msra.mxu3 %v1486_v38 }
  0x16   :  { %306 = vmatpush.msrb.mxu0 %v1488_v39  ;;  %146 = vmatpush.msra.mxu1 %v1501_v42 }
  0x17   :  { %166 = vmatpush.msra.mxu2 %v1503_v43  ;;  %287 = vmatpush.msra.mxu3 %v1501_v42 }
  0x18   :  { %307 = vmatpush.msrb.mxu0 %v1503_v43  ;;  %420 = vmatpush.msrb.mxu1 %v1444_v26 }
  0x19   :  { %440 = vmatpush.msrb.mxu2 %v1446_v27  ;;  %560 = vmatpush.msrb.mxu3 %v1444_v26 }
  0x1a   :  { %580 = vmatpush.msra.mxu0 %v1446_v27  ;;  %421 = vmatpush.msrb.mxu1 %v1448_v28 }
  0x1b   :  { %441 = vmatpush.msrb.mxu2 %v1452_v29  ;;  %561 = vmatpush.msrb.mxu3 %v1448_v28 }
  0x1c   :  { %581 = vmatpush.msra.mxu0 %v1452_v29  ;;  %422 = vmatpush.msrb.mxu1 %v1454_v30 }
  0x1d   :  { %442 = vmatpush.msrb.mxu2 %v1456_v31  ;;  %562 = vmatpush.msrb.mxu3 %v1454_v30 }
  0x1e   :  { %582 = vmatpush.msra.mxu0 %v1456_v31  ;;  %423 = vmatpush.msrb.mxu1 %v1462_v32 }
  0x1f   :  { %443 = vmatpush.msrb.mxu2 %v1464_v33  ;;  %563 = vmatpush.msrb.mxu3 %v1462_v32 }
  0x20   :  { %583 = vmatpush.msra.mxu0 %v1464_v33  ;;  %424 = vmatpush.msrb.mxu1 %v1470_v34 }
  0x21   :  { %444 = vmatpush.msrb.mxu2 %v1472_v35  ;;  %564 = vmatpush.msrb.mxu3 %v1470_v34 }
  0x22   :  { %584 = vmatpush.msra.mxu0 %v1472_v35  ;;  %425 = vmatpush.msrb.mxu1 %v1478_v36 }
  0x23   :  { %445 = vmatpush.msrb.mxu2 %v1480_v37  ;;  %565 = vmatpush.msrb.mxu3 %v1478_v36 }
  0x24   :  { %585 = vmatpush.msra.mxu0 %v1480_v37  ;;  %426 = vmatpush.msrb.mxu1 %v1486_v38 }
  0x25   :  { %446 = vmatpush.msrb.mxu2 %v1488_v39  ;;  %566 = vmatpush.msrb.mxu3 %v1486_v38 }
  0x26   :  { %586 = vmatpush.msra.mxu0 %v1488_v39  ;;  %427 = vmatpush.msrb.mxu1 %v1501_v42 }
  0x27   :  { %447 = vmatpush.msrb.mxu2 %v1503_v43  ;;  %567 = vmatpush.msrb.mxu3 %v1501_v42 }
  0x28   :  { %587 = vmatpush.msra.mxu0 %v1503_v43 }
  0x86   :  { %v78_v4 = vpop.f32.mrf.mxu0 }
  0x87   :  { %v1434_v5 = vadd.f32 %v78_v4, %v1431_v3 }
  0x89   :  { %1249 = vtanh.f32 %v1434_v5  ;;  %v1211_v7 = vmul.f32 -1.442695, %v1434_v5 }
  0x8b   :  { %1251 = vpow2.f32 %v1211_v7 }
  0x8f   :  { %v1250_v6 = vpop.eup %1249 }
  0x90   :  { %106 = vrot.lane.b32.xlu0 %v1250_v6, %s1407_s1 }
  0x91   :  { %v1252_v8 = vpop.eup %1251 }
  0x92   :  { %v87_v9 = vadd.f32 1.0, %v1252_v8 }
  0x94   :  { %1253 = vrcp.f32 %v87_v9  ;;  %v99_v15 = vand.u32 2147483648, %v87_v9  ;;  %vm93_vm2 = vweird.f32 %v87_v9  ;;  %v97_v16 = vand.u32 2147483647, %v87_v9 }
  0x96   :  { %v100_v18 = vor.u32 1.1754944e-38, %v99_v15  ;;  %vm98_vm4 = vcmp.eq.f32.partialorder %v97_v16, 8.507059e+37 }
  0x9a   :  { %v1254_v10 = vpop.eup %1253 }
  0x9b   :  { %v89_v11 = vmul.f32 %v1254_v10, %v87_v9  ;;  %vm94_vm1 = vweird.f32 %v1254_v10 }
  0x9c   :  { %vm95_vm3 = vmor %vm93_vm2, %vm94_vm1 }
  0x9d   :  { %v90_v12 = vsub.f32 1.0, %v89_v11 }
  0x9f   :  { %v91_v13 = vmul.f32 %v1254_v10, %v90_v12 }
  0xa1   :  { %v92_v14 = vadd.f32 %v1254_v10, %v91_v13 }
  0xa3   :  { %v96_v17 = vsel %vm95_vm3, %v1254_v10, %v92_v14 }
  0xa4   :  { %v101_v20 = vsel %vm98_vm4, %v100_v18, %v96_v17 }
  0xa5   :  { %v104_v22 = vmul.f32 0.0, %v101_v20 }
 0x102   :  { %v107_v19 = vpop.permute.xlu0 %106 }
 0x103   :  { %v109_v21 = vmul.f32 %v107_v19, %v101_v20 }
 0x105   :  { %111 = vrot.lane.b32.xlu0 %v109_v21, %s1408_s18 }
 0x177   :  { %v112_v23 = vpop.permute.xlu0 %111 }
 0x178   :  { %v1440_v24 = vadd.f32 %v112_v23, %v104_v22 }
 0x17a   :  { %1255 = vtanh.f32 %v1440_v24 }
 0x180   :  { %v1256_v25 = vpop.eup %1255 }
 0x181   :  { %117 = vrot.lane.b32.xlu1 %v1256_v25, %s1407_s1 }
 0x1f3   :  { %v118_v40 = vpop.permute.xlu1 %117 }
 0x1f4   :  { %v120_v41 = vmul.f32 %v118_v40, %v101_v20  ;;  %v240_v40 = vrot.slane %v1440_v24, 6 }
 0x1f6   :  { %122 = vrot.lane.b32.xlu1 %v120_v41, %s1408_s18 }
 0x268   :  { %v123_v44 = vpop.permute.xlu1 %122 }
 0x269   :  { %v126_v45 = vsel %vm125_vm5, %v123_v44, 0.0 }
 0x26a   :  { %1212 = vmatmul.msk.f32.vlgmr.msra.gmra.mxu1 %vm127_vm6, %v126_v45  ;;  %1213 = vmatmul.msk.f32.vlgmr.msra.gmra.mxu2 %vm127_vm6, %v126_v45 }
 0x26b   :  { %695 = vmatpush.msra.mxu1 %v1444_v26  ;;  %715 = vmatpush.msra.mxu2 %v1446_v27 }
 0x26d   :  { %696 = vmatpush.msra.mxu1 %v1448_v28  ;;  %716 = vmatpush.msra.mxu2 %v1452_v29 }
 0x26f   :  { %697 = vmatpush.msra.mxu1 %v1454_v30  ;;  %717 = vmatpush.msra.mxu2 %v1456_v31 }
 0x271   :  { %698 = vmatpush.msra.mxu1 %v1462_v32  ;;  %718 = vmatpush.msra.mxu2 %v1464_v33 }
 0x273   :  { %699 = vmatpush.msra.mxu1 %v1470_v34  ;;  %719 = vmatpush.msra.mxu2 %v1472_v35 }
 0x275   :  { %700 = vmatpush.msra.mxu1 %v1478_v36  ;;  %720 = vmatpush.msra.mxu2 %v1480_v37 }
 0x277   :  { %701 = vmatpush.msra.mxu1 %v1486_v38  ;;  %721 = vmatpush.msra.mxu2 %v1488_v39 }
 0x279   :  { %702 = vmatpush.msra.mxu1 %v1501_v42  ;;  %722 = vmatpush.msra.mxu2 %v1503_v43 }
 0x2e7   :  { %v148_v47 = vpop.f32.mrf.mxu1 }
 0x2e8   :  { %v216_v50 = vrot.slane %v148_v47, 6 }
 0x2ea   :  { %v218_v51 = vadd.f32 %v216_v50, %v1434_v5 }
 0x2ec   :  { %v1215_v55 = vmul.f32 -1.442695, %v218_v51 }
 0x2ed   :  { %v168_v48 = vpop.f32.mrf.mxu2 }
 0x2ee   :  { %v171_v49 = vadd.f32 %v168_v48, %v1560_v46 }
 0x2f0   :  { %1257 = vtanh.f32 %v171_v49  ;;  %v1214_v54 = vmul.f32 -1.442695, %v171_v49 }
 0x2f1   :  { %1259 = vtanh.f32 %v218_v51 }
 0x2f2   :  { %1261 = vpow2.f32 %v1214_v54 }
 0x2f3   :  { %1263 = vpow2.f32 %v1215_v55 }
 0x2f6   :  { %v1258_v52 = vpop.eup %1257 }
 0x2f7   :  { %194 = vrot.lane.b32.xlu2 %v1258_v52, %s1407_s1  ;;  %v1260_v53 = vpop.eup %1259 }
 0x2f8   :  { %v1262_v56 = vpop.eup %1261 }
 0x2f9   :  { %v175_v57 = vadd.f32 1.0, %v1262_v56  ;;  %v1264_v58 = vpop.eup %1263 }
 0x2fa   :  { %v222_v59 = vadd.f32 1.0, %v1264_v58 }
 0x2fb   :  { %1265 = vrcp.f32 %v175_v57  ;;  %v187_v6 = vand.u32 2147483648, %v175_v57  ;;  %vm181_vm8 = vweird.f32 %v175_v57  ;;  %v185_v7 = vand.u32 2147483647, %v175_v57 }
 0x2fc   :  { %1267 = vrcp.f32 %v222_v59  ;;  %v234_v15 = vand.u32 2147483648, %v222_v59  ;;  %vm228_vm12 = vweird.f32 %v222_v59  ;;  %v232_v16 = vand.u32 2147483647, %v222_v59 }
 0x2fd   :  { %v188_v10 = vor.u32 1.1754944e-38, %v187_v6  ;;  %vm186_vm10 = vcmp.eq.f32.partialorder %v185_v7, 8.507059e+37 }
 0x2fe   :  { %v235_v18 = vor.u32 1.1754944e-38, %v234_v15  ;;  %vm233_vm14 = vcmp.eq.f32.partialorder %v232_v16, 8.507059e+37 }
 0x2ff   :  { %244 = vrot.lane.b32.xlu2 %v1260_v53, %s1407_s1  ;;  %v53_v53 = vld [vmem:[%s1805_s0 + $0x8] sm:$0xff] }
 0x300   :  { %1210 = vmatmul.msk.f32.gmra.mxu0 %vm54_vm0, %v53_v53 }
 0x301   :  { %v1266_v60 = vpop.eup %1265 }
 0x302   :  { %v177_v61 = vmul.f32 %v1266_v60, %v175_v57  ;;  %v1268_v63 = vpop.eup %1267  ;;  %vm182_vm7 = vweird.f32 %v1266_v60 }
 0x303   :  { %v224_v1 = vmul.f32 %v1268_v63, %v222_v59  ;;  %vm183_vm9 = vmor %vm181_vm8, %vm182_vm7  ;;  %vm229_vm11 = vweird.f32 %v1268_v63 }
 0x304   :  { %v178_v62 = vsub.f32 1.0, %v177_v61  ;;  %vm230_vm13 = vmor %vm228_vm12, %vm229_vm11 }
 0x305   :  { %v225_v4 = vsub.f32 1.0, %v224_v1 }
 0x306   :  { %v179_v0 = vmul.f32 %v1266_v60, %v178_v62 }
 0x307   :  { %v226_v9 = vmul.f32 %v1268_v63, %v225_v4 }
 0x308   :  { %v180_v2 = vadd.f32 %v1266_v60, %v179_v0 }
 0x309   :  { %v227_v14 = vadd.f32 %v1268_v63, %v226_v9 }
 0x30a   :  { %v184_v8 = vsel %vm183_vm9, %v1266_v60, %v180_v2 }
 0x30b   :  { %v189_v12 = vsel %vm186_vm10, %v188_v10, %v184_v8  ;;  %v231_v17 = vsel %vm230_vm13, %v1268_v63, %v227_v14 }
 0x30c   :  { %v236_v20 = vsel %vm233_vm14, %v235_v18, %v231_v17  ;;  %v192_v22 = vmul.f32 0.0, %v189_v12 }
 0x30d   :  { %v242_v41 = vmul.f32 %v240_v40, %v236_v20 }
 0x351   :  { %v195_v11 = vpop.permute.xlu2 %194 }
 0x352   :  { %v197_v13 = vmul.f32 %v195_v11, %v189_v12 }
 0x354   :  { %199 = vrot.lane.b32.xlu0 %v197_v13, %s1408_s18 }
 0x359   :  { %v245_v19 = vpop.permute.xlu2 %244 }
 0x35a   :  { %v247_v21 = vmul.f32 %v245_v19, %v236_v20 }
 0x35c   :  { %249 = vrot.lane.b32.xlu1 %v247_v21, %s1408_s18 }
 0x37d   :  { %v1605_v58 = vpop.f32.mrf.mxu0 }
 0x3c6   :  { %v200_v23 = vpop.permute.xlu0 %199 }
 0x3c7   :  { %v1568_v25 = vadd.f32 %v200_v23, %v192_v22 }
 0x3c9   :  { %1269 = vtanh.f32 %v1568_v25 }
 0x3ce   :  { %v250_v44 = vpop.permute.xlu1 %249 }
 0x3cf   :  { %v1270_v45 = vpop.eup %1269  ;;  %v1572_v47 = vadd.f32 %v250_v44, %v242_v41 }
 0x3d0   :  { %205 = vrot.lane.b32.xlu2 %v1270_v45, %s1407_s1 }
 0x3d1   :  { %1271 = vtanh.f32 %v1572_v47 }
 0x3d7   :  { %v1272_v48 = vpop.eup %1271 }
 0x3d8   :  { %255 = vrot.lane.b32.xlu0 %v1272_v48, %s1407_s1 }
 0x42a   :  { %v206_v49 = vpop.permute.xlu2 %205 }
 0x42b   :  { %v1577_v50 = vmul.f32 %v206_v49, %v189_v12 }
 0x42d   :  { %v263_v51 = vrot.slane %v1577_v50, 6 }
 0x42f   :  { %264 = vrot.lane.b32.xlu2 %v263_v51, %s1407_s1 }
 0x44a   :  { %v256_v24 = vpop.permute.xlu0 %255 }
 0x44b   :  { %v258_v52 = vmul.f32 %v256_v24, %v236_v20 }
 0x44d   :  { %260 = vrot.lane.b32.xlu1 %v258_v52, %s1408_s18 }
 0x489   :  { %v265_v54 = vpop.permute.xlu2 %264 }
 0x4bf   :  { %v261_v55 = vpop.permute.xlu1 %260 }
 0x4c0   :  { %v267_v56 = vsel %vm125_vm5, %v261_v55, %v265_v54 }
 0x4c1   :  { %v269_v57 = vrot.slane %v267_v56, 2 }
 0x4c3   :  { %1216 = vmatmul.msk.f32.vlgmr.msra.gmra.mxu3 %vm127_vm6, %v269_v57  ;;  %1217 = vmatmul.msk.f32.vlgmr.msrb.gmra.mxu0 %vm127_vm6, %v269_v57 }
 0x4c4   :  { %835 = vmatpush.msra.mxu3 %v1444_v26  ;;  %855 = vmatpush.msrb.mxu0 %v1446_v27 }
 0x4c6   :  { %836 = vmatpush.msra.mxu3 %v1448_v28  ;;  %856 = vmatpush.msrb.mxu0 %v1452_v29 }
 0x4c8   :  { %837 = vmatpush.msra.mxu3 %v1454_v30  ;;  %857 = vmatpush.msrb.mxu0 %v1456_v31 }
 0x4ca   :  { %838 = vmatpush.msra.mxu3 %v1462_v32  ;;  %858 = vmatpush.msrb.mxu0 %v1464_v33 }
 0x4cc   :  { %839 = vmatpush.msra.mxu3 %v1470_v34  ;;  %859 = vmatpush.msrb.mxu0 %v1472_v35 }
 0x4ce   :  { %840 = vmatpush.msra.mxu3 %v1478_v36  ;;  %860 = vmatpush.msrb.mxu0 %v1480_v37 }
 0x4d0   :  { %841 = vmatpush.msra.mxu3 %v1486_v38  ;;  %861 = vmatpush.msrb.mxu0 %v1488_v39 }
 0x4d2   :  { %842 = vmatpush.msra.mxu3 %v1501_v42  ;;  %862 = vmatpush.msrb.mxu0 %v1503_v43 }
 0x540   :  { %v309_v59 = vpop.f32.mrf.mxu0 }
 0x541   :  { %v312_v60 = vadd.f32 %v309_v59, %v1560_v46  ;;  %v380_v59 = vrot.slane %v1572_v47, 6 }
 0x543   :  { %1273 = vtanh.f32 %v312_v60  ;;  %v1218_v2 = vmul.f32 -1.442695, %v312_v60 }
 0x546   :  { %v289_v61 = vpop.f32.mrf.mxu3 }
 0x547   :  { %v356_v62 = vrot.slane %v289_v61, 4 }
 0x549   :  { %v1274_v63 = vpop.eup %1273  ;;  %v358_v0 = vadd.f32 %v356_v62, %v1434_v5 }
 0x54a   :  { %335 = vrot.lane.b32.xlu0 %v1274_v63, %s1407_s1 }
 0x54b   :  { %1275 = vtanh.f32 %v358_v0  ;;  %v1219_v4 = vmul.f32 -1.442695, %v358_v0 }
 0x54c   :  { %1277 = vpow2.f32 %v1218_v2 }
 0x54d   :  { %1279 = vpow2.f32 %v1219_v4 }
 0x551   :  { %v1276_v1 = vpop.eup %1275 }
 0x552   :  { %384 = vrot.lane.b32.xlu1 %v1276_v1, %s1407_s1  ;;  %v1278_v6 = vpop.eup %1277 }
 0x553   :  { %v316_v7 = vadd.f32 1.0, %v1278_v6  ;;  %v1280_v8 = vpop.eup %1279 }
 0x554   :  { %v362_v9 = vadd.f32 1.0, %v1280_v8 }
 0x555   :  { %1281 = vrcp.f32 %v316_v7  ;;  %v328_v18 = vand.u32 2147483648, %v316_v7  ;;  %vm322_vm0 = vweird.f32 %v316_v7  ;;  %v326_v19 = vand.u32 2147483647, %v316_v7 }
 0x556   :  { %1283 = vrcp.f32 %v362_v9  ;;  %v374_v45 = vand.u32 2147483648, %v362_v9  ;;  %vm368_vm4 = vweird.f32 %v362_v9  ;;  %v372_v48 = vand.u32 2147483647, %v362_v9 }
 0x557   :  { %v329_v22 = vor.u32 1.1754944e-38, %v328_v18  ;;  %vm327_vm2 = vcmp.eq.f32.partialorder %v326_v19, 8.507059e+37 }
 0x558   :  { %v375_v51 = vor.u32 1.1754944e-38, %v374_v45  ;;  %vm373_vm8 = vcmp.eq.f32.partialorder %v372_v48, 8.507059e+37 }
 0x55b   :  { %v1282_v10 = vpop.eup %1281 }
 0x55c   :  { %v318_v11 = vmul.f32 %v1282_v10, %v316_v7  ;;  %v1284_v13 = vpop.eup %1283  ;;  %vm323_vm15 = vweird.f32 %v1282_v10 }
 0x55d   :  { %v364_v15 = vmul.f32 %v1284_v13, %v362_v9  ;;  %vm324_vm1 = vmor %vm322_vm0, %vm323_vm15  ;;  %vm369_vm3 = vweird.f32 %v1284_v13 }
 0x55e   :  { %v319_v12 = vsub.f32 1.0, %v318_v11  ;;  %vm370_vm7 = vmor %vm368_vm4, %vm369_vm3 }
 0x55f   :  { %v365_v17 = vsub.f32 1.0, %v364_v15 }
 0x560   :  { %v320_v14 = vmul.f32 %v1282_v10, %v319_v12 }
 0x561   :  { %v366_v21 = vmul.f32 %v1284_v13, %v365_v17 }
 0x562   :  { %v321_v16 = vadd.f32 %v1282_v10, %v320_v14 }
 0x563   :  { %v367_v44 = vadd.f32 %v1284_v13, %v366_v21 }
 0x564   :  { %v325_v20 = vsel %vm324_vm1, %v1282_v10, %v321_v16 }
 0x565   :  { %v330_v40 = vsel %vm327_vm2, %v329_v22, %v325_v20  ;;  %v371_v49 = vsel %vm370_vm7, %v1284_v13, %v367_v44 }
 0x566   :  { %v376_v52 = vsel %vm373_vm8, %v375_v51, %v371_v49  ;;  %v333_v54 = vmul.f32 %v330_v40, %v1568_v25 }
 0x567   :  { %v382_v60 = vmul.f32 %v380_v59, %v376_v52 }
 0x5bc   :  { %v336_v23 = vpop.permute.xlu0 %335 }
 0x5bd   :  { %v338_v41 = vmul.f32 %v336_v23, %v330_v40 }
 0x5bf   :  { %340 = vrot.lane.b32.xlu2 %v338_v41, %s1408_s18 }
 0x5c4   :  { %v385_v24 = vpop.permute.xlu1 %384 }
 0x5c5   :  { %v387_v53 = vmul.f32 %v385_v24, %v376_v52 }
 0x5c7   :  { %389 = vrot.lane.b32.xlu0 %v387_v53, %s1408_s18 }
 0x619   :  { %v341_v55 = vpop.permute.xlu2 %340 }
 0x61a   :  { %v1614_v56 = vadd.f32 %v341_v55, %v333_v54 }
 0x61c   :  { %1285 = vtanh.f32 %v1614_v56 }
 0x622   :  { %v1286_v57 = vpop.eup %1285 }
 0x623   :  { %346 = vrot.lane.b32.xlu1 %v1286_v57, %s1407_s1 }
 0x639   :  { %v390_v61 = vpop.permute.xlu0 %389 }
 0x63a   :  { %v1619_v62 = vadd.f32 %v390_v61, %v382_v60 }
 0x63c   :  { %1287 = vtanh.f32 %v1619_v62  ;;  %v520_v59 = vrot.slane %v1619_v62, 6 }
 0x642   :  { %v1288_v63 = vpop.eup %1287 }
 0x643   :  { %395 = vrot.lane.b32.xlu2 %v1288_v63, %s1407_s1 }
 0x695   :  { %v347_v25 = vpop.permute.xlu1 %346 }
 0x696   :  { %v1623_v0 = vmul.f32 %v347_v25, %v330_v40 }
 0x698   :  { %v403_v1 = vrot.slane %v1623_v0, 4 }
 0x69a   :  { %404 = vrot.lane.b32.xlu1 %v403_v1, %s1407_s1 }
 0x69d   :  { %v396_v2 = vpop.permute.xlu2 %395 }
 0x69e   :  { %v398_v4 = vmul.f32 %v396_v2, %v376_v52 }
 0x6a0   :  { %400 = vrot.lane.b32.xlu0 %v398_v4, %s1408_s18 }
 0x70c   :  { %v405_v47 = vpop.permute.xlu1 %404 }
 0x712   :  { %v401_v6 = vpop.permute.xlu0 %400 }
 0x713   :  { %v407_v7 = vsel %vm125_vm5, %v401_v6, %v405_v47 }
 0x714   :  { %v409_v8 = vrot.slane %v407_v7, 4 }
 0x716   :  { %1220 = vmatmul.msk.f32.vlgmr.msrb.gmra.mxu1 %vm127_vm6, %v409_v8  ;;  %1221 = vmatmul.msk.f32.vlgmr.msrb.gmra.mxu2 %vm127_vm6, %v409_v8 }
 0x717   :  { %975 = vmatpush.msrb.mxu1 %v1444_v26  ;;  %995 = vmatpush.msrb.mxu2 %v1446_v27 }
 0x719   :  { %976 = vmatpush.msrb.mxu1 %v1448_v28  ;;  %996 = vmatpush.msrb.mxu2 %v1452_v29 }
 0x71b   :  { %977 = vmatpush.msrb.mxu1 %v1454_v30  ;;  %997 = vmatpush.msrb.mxu2 %v1456_v31 }
 0x71d   :  { %978 = vmatpush.msrb.mxu1 %v1462_v32  ;;  %998 = vmatpush.msrb.mxu2 %v1464_v33 }
 0x71f   :  { %979 = vmatpush.msrb.mxu1 %v1470_v34  ;;  %999 = vmatpush.msrb.mxu2 %v1472_v35 }
 0x721   :  { %980 = vmatpush.msrb.mxu1 %v1478_v36  ;;  %1000 = vmatpush.msrb.mxu2 %v1480_v37 }
 0x723   :  { %981 = vmatpush.msrb.mxu1 %v1486_v38  ;;  %1001 = vmatpush.msrb.mxu2 %v1488_v39 }
 0x725   :  { %982 = vmatpush.msrb.mxu1 %v1501_v42  ;;  %1002 = vmatpush.msrb.mxu2 %v1503_v43 }
 0x793   :  { %v429_v26 = vpop.f32.mrf.mxu1 }
 0x794   :  { %v496_v28 = vrot.slane %v429_v26, 2 }
 0x796   :  { %v498_v30 = vadd.f32 %v496_v28, %v1434_v5 }
 0x798   :  { %1289 = vtanh.f32 %v498_v30  ;;  %v1223_v11 = vmul.f32 -1.442695, %v498_v30 }
 0x799   :  { %v449_v32 = vpop.f32.mrf.mxu2 }
 0x79a   :  { %v452_v34 = vadd.f32 %v449_v32, %v1560_v46 }
 0x79c   :  { %1291 = vtanh.f32 %v452_v34  ;;  %v1222_v38 = vmul.f32 -1.442695, %v452_v34 }
 0x79e   :  { %v1290_v36 = vpop.eup %1289  ;;  %1293 = vpow2.f32 %v1222_v38 }
 0x79f   :  { %524 = vrot.lane.b32.xlu0 %v1290_v36, %s1407_s1 }
 0x7a2   :  { %v1292_v9 = vpop.eup %1291 }
 0x7a3   :  { %475 = vrot.lane.b32.xlu2 %v1292_v9, %s1407_s1 }
 0x7a4   :  { %v1294_v42 = vpop.eup %1293 }
 0x7a5   :  { %v456_v10 = vadd.f32 1.0, %v1294_v42 }
 0x7a7   :  { %1295 = vrcp.f32 %v456_v10  ;;  %v468_v18 = vand.u32 2147483648, %v456_v10  ;;  %vm462_vm10 = vweird.f32 %v456_v10  ;;  %v466_v19 = vand.u32 2147483647, %v456_v10 }
 0x7a8   :  { %1297 = vpow2.f32 %v1223_v11 }
 0x7a9   :  { %v469_v22 = vor.u32 1.1754944e-38, %v468_v18  ;;  %vm467_vm12 = vcmp.eq.f32.partialorder %v466_v19, 8.507059e+37 }
 0x7ad   :  { %v1296_v12 = vpop.eup %1295 }
 0x7ae   :  { %v458_v5 = vmul.f32 %v1296_v12, %v456_v10  ;;  %v1298_v13 = vpop.eup %1297  ;;  %vm463_vm9 = vweird.f32 %v1296_v12 }
 0x7af   :  { %v502_v15 = vadd.f32 1.0, %v1298_v13  ;;  %vm464_vm11 = vmor %vm462_vm10, %vm463_vm9 }
 0x7b0   :  { %v459_v14 = vsub.f32 1.0, %v458_v5 }
 0x7b1   :  { %1299 = vrcp.f32 %v502_v15  ;;  %v514_v51 = vand.u32 2147483648, %v502_v15  ;;  %vm508_vm14 = vweird.f32 %v502_v15  ;;  %v512_v24 = vand.u32 2147483647, %v502_v15 }
 0x7b2   :  { %v460_v16 = vmul.f32 %v1296_v12, %v459_v14 }
 0x7b3   :  { %v515_v53 = vor.u32 1.1754944e-38, %v514_v51  ;;  %vm513_vm0 = vcmp.eq.f32.partialorder %v512_v24, 8.507059e+37 }
 0x7b4   :  { %v461_v17 = vadd.f32 %v1296_v12, %v460_v16 }
 0x7b6   :  { %v465_v20 = vsel %vm464_vm11, %v1296_v12, %v461_v17 }
 0x7b7   :  { %v1300_v21 = vpop.eup %1299  ;;  %v470_v40 = vsel %vm467_vm12, %v469_v22, %v465_v20 }
 0x7b8   :  { %v504_v44 = vmul.f32 %v1300_v21, %v502_v15  ;;  %vm509_vm13 = vweird.f32 %v1300_v21  ;;  %v473_v25 = vmul.f32 %v470_v40, %v1614_v56 }
 0x7b9   :  { %vm510_vm15 = vmor %vm508_vm14, %vm509_vm13 }
 0x7ba   :  { %v505_v45 = vsub.f32 1.0, %v504_v44 }
 0x7bc   :  { %v506_v48 = vmul.f32 %v1300_v21, %v505_v45 }
 0x7be   :  { %v507_v49 = vadd.f32 %v1300_v21, %v506_v48 }
 0x7c0   :  { %v511_v52 = vsel %vm510_vm15, %v1300_v21, %v507_v49 }
 0x7c1   :  { %v516_v55 = vsel %vm513_vm0, %v515_v53, %v511_v52 }
 0x7c2   :  { %v522_v60 = vmul.f32 %v520_v59, %v516_v55 }
 0x7fd   :  { %v476_v23 = vpop.permute.xlu2 %475 }
 0x7fe   :  { %v478_v41 = vmul.f32 %v476_v23, %v470_v40 }
 0x800   :  { %480 = vrot.lane.b32.xlu1 %v478_v41, %s1408_s18 }
 0x811   :  { %v525_v54 = vpop.permute.xlu0 %524 }
 0x812   :  { %v527_v57 = vmul.f32 %v525_v54, %v516_v55 }
 0x814   :  { %529 = vrot.lane.b32.xlu2 %v527_v57, %s1408_s18 }
 0x86e   :  { %v530_v61 = vpop.permute.xlu2 %529 }
 0x86f   :  { %v1654_v63 = vadd.f32 %v530_v61, %v522_v60 }
 0x871   :  { %1301 = vtanh.f32 %v1654_v63  ;;  %v657_v24 = vrot.slane %v1654_v63, 6 }
 0x872   :  { %v481_v1 = vpop.permute.xlu1 %480 }
 0x873   :  { %v1658_v2 = vadd.f32 %v481_v1, %v473_v25 }
 0x875   :  { %1303 = vtanh.f32 %v1658_v2 }
 0x877   :  { %v1302_v4 = vpop.eup %1301 }
 0x878   :  { %535 = vrot.lane.b32.xlu1 %v1302_v4, %s1407_s1 }
 0x87b   :  { %v1304_v47 = vpop.eup %1303 }
 0x87c   :  { %486 = vrot.lane.b32.xlu0 %v1304_v47, %s1407_s1 }
 0x8ea   :  { %v536_v62 = vpop.permute.xlu1 %535 }
 0x8eb   :  { %v538_v6 = vmul.f32 %v536_v62, %v516_v55 }
 0x8ed   :  { %540 = vrot.lane.b32.xlu2 %v538_v6, %s1408_s18 }
 0x8ee   :  { %v487_v7 = vpop.permute.xlu0 %486 }
 0x8ef   :  { %v1664_v8 = vmul.f32 %v487_v7, %v470_v40 }
 0x8f1   :  { %v543_v56 = vrot.slane %v1664_v8, 2 }
 0x8f3   :  { %544 = vrot.lane.b32.xlu0 %v543_v56, %s1407_s1 }
 0x947   :  { %v541_v26 = vpop.permute.xlu2 %540 }
 0x965   :  { %v545_v28 = vpop.permute.xlu0 %544 }
 0x966   :  { %v547_v30 = vsel %vm125_vm5, %v541_v26, %v545_v28 }
 0x967   :  { %v549_v32 = vrot.slane %v547_v30, 6 }
 0x969   :  { %1224 = vmatmul.msk.f32.vlgmr.msrb.gmra.mxu3 %vm127_vm6, %v549_v32  ;;  %1225 = vmatmul.msk.f32.vlgmr.msra.gmra.mxu0 %vm127_vm6, %v549_v32 }
 0x96a   :  { %1115 = vmatpush.msrb.mxu3 %v1446_v27  ;;  %v1682_v27 = vadd.f32 %v1605_v58, %v1431_v3 }
 0x96c   :  { %1116 = vmatpush.msrb.mxu3 %v1452_v29 }
 0x96e   :  { %1117 = vmatpush.msrb.mxu3 %v1456_v31 }
 0x970   :  { %1118 = vmatpush.msrb.mxu3 %v1464_v33 }
 0x972   :  { %1119 = vmatpush.msrb.mxu3 %v1472_v35 }
 0x974   :  { %1120 = vmatpush.msrb.mxu3 %v1480_v37 }
 0x976   :  { %1121 = vmatpush.msrb.mxu3 %v1488_v39 }
 0x978   :  { %1122 = vmatpush.msrb.mxu3 %v1503_v43 }
 0x9e6   :  { %v589_v34 = vpop.f32.mrf.mxu0 }
 0x9e7   :  { %v592_v36 = vadd.f32 %v589_v34, %v1560_v46 }
 0x9e9   :  { %1305 = vtanh.f32 %v592_v36  ;;  %v1226_v9 = vmul.f32 -1.442695, %v592_v36 }
 0x9ec   :  { %v569_v29 = vpop.f32.mrf.mxu3 }
 0x9ed   :  { %v635_v31 = vadd.f32 %v569_v29, %v1682_v27 }
 0x9ef   :  { %v1306_v33 = vpop.eup %1305  ;;  %1307 = vtanh.f32 %v635_v31  ;;  %v1227_v37 = vmul.f32 -1.442695, %v635_v31 }
 0x9f0   :  { %615 = vrot.lane.b32.xlu1 %v1306_v33, %s1407_s1 }
 0x9f1   :  { %1309 = vpow2.f32 %v1227_v37 }
 0x9f5   :  { %v1308_v35 = vpop.eup %1307 }
 0x9f6   :  { %661 = vrot.lane.b32.xlu2 %v1308_v35, %s1407_s1 }
 0x9f7   :  { %v1310_v39 = vpop.eup %1309 }
 0x9f8   :  { %v639_v43 = vadd.f32 1.0, %v1310_v39 }
 0x9fa   :  { %1311 = vrcp.f32 %v639_v43  ;;  %v651_v5 = vand.u32 2147483648, %v639_v43  ;;  %vm645_vm2 = vweird.f32 %v639_v43  ;;  %v649_v13 = vand.u32 2147483647, %v639_v43 }
 0x9fb   :  { %1313 = vpow2.f32 %v1226_v9 }
 0x9fc   :  { %v652_v16 = vor.u32 1.1754944e-38, %v651_v5  ;;  %vm650_vm4 = vcmp.eq.f32.partialorder %v649_v13, 8.507059e+37 }
 0xa00   :  { %v1312_v38 = vpop.eup %1311 }
 0xa01   :  { %v641_v3 = vmul.f32 %v1312_v38, %v639_v43  ;;  %v1314_v58 = vpop.eup %1313  ;;  %vm646_vm1 = vweird.f32 %v1312_v38 }
 0xa02   :  { %v596_v10 = vadd.f32 1.0, %v1314_v58  ;;  %vm647_vm3 = vmor %vm645_vm2, %vm646_vm1 }
 0xa03   :  { %v642_v42 = vsub.f32 1.0, %v641_v3 }
 0xa04   :  { %1315 = vrcp.f32 %v596_v10  ;;  %v608_v40 = vand.u32 2147483648, %v596_v10  ;;  %vm602_vm8 = vweird.f32 %v596_v10  ;;  %v606_v41 = vand.u32 2147483647, %v596_v10 }
 0xa05   :  { %v643_v11 = vmul.f32 %v1312_v38, %v642_v42 }
 0xa06   :  { %v609_v45 = vor.u32 1.1754944e-38, %v608_v40  ;;  %vm607_vm10 = vcmp.eq.f32.partialorder %v606_v41, 8.507059e+37 }
 0xa07   :  { %v644_v12 = vadd.f32 %v1312_v38, %v643_v11 }
 0xa09   :  { %v648_v15 = vsel %vm647_vm3, %v1312_v38, %v644_v12 }
 0xa0a   :  { %v1316_v14 = vpop.eup %1315  ;;  %v653_v19 = vsel %vm650_vm4, %v652_v16, %v648_v15 }
 0xa0b   :  { %v598_v17 = vmul.f32 %v1316_v14, %v596_v10  ;;  %vm603_vm7 = vweird.f32 %v1316_v14  ;;  %v659_v52 = vmul.f32 %v657_v24, %v653_v19 }
 0xa0c   :  { %vm604_vm9 = vmor %vm602_vm8, %vm603_vm7 }
 0xa0d   :  { %v599_v21 = vsub.f32 1.0, %v598_v17 }
 0xa0f   :  { %v600_v22 = vmul.f32 %v1316_v14, %v599_v21 }
 0xa11   :  { %v601_v23 = vadd.f32 %v1316_v14, %v600_v22 }
 0xa13   :  { %v605_v44 = vsel %vm604_vm9, %v1316_v14, %v601_v23 }
 0xa14   :  { %v610_v49 = vsel %vm607_vm10, %v609_v45, %v605_v44 }
 0xa15   :  { %v613_v57 = vmul.f32 %v610_v49, %v1658_v2 }
 0xa50   :  { %v662_v18 = vpop.permute.xlu2 %661 }
 0xa51   :  { %v664_v20 = vmul.f32 %v662_v18, %v653_v19 }
 0xa53   :  { %666 = vrot.lane.b32.xlu1 %v664_v20, %s1408_s18 }
 0xa62   :  { %v616_v48 = vpop.permute.xlu1 %615 }
 0xa63   :  { %v618_v51 = vmul.f32 %v616_v48, %v610_v49 }
 0xa65   :  { %620 = vrot.lane.b32.xlu0 %v618_v51, %s1408_s18 }
 0xac5   :  { %v667_v53 = vpop.permute.xlu1 %666 }
 0xac6   :  { %v1690_v54 = vadd.f32 %v667_v53, %v659_v52 }
 0xac8   :  { %1317 = vtanh.f32 %v1690_v54 }
 0xace   :  { %v1318_v55 = vpop.eup %1317 }
 0xacf   :  { %672 = vrot.lane.b32.xlu0 %v1318_v55, %s1407_s1 }
 0xad7   :  { %v621_v59 = vpop.permute.xlu0 %620 }
 0xad8   :  { %v1695_v60 = vadd.f32 %v621_v59, %v613_v57 }
 0xada   :  { %1319 = vtanh.f32 %v1695_v60 }
 0xae0   :  { %v1320_v61 = vpop.eup %1319 }
 0xae1   :  { %626 = vrot.lane.b32.xlu2 %v1320_v61, %s1407_s1 }
 0xb3b   :  { %v627_v63 = vpop.permute.xlu2 %626 }
 0xb3c   :  { %v1699_v25 = vmul.f32 %v627_v63, %v610_v49  ;;  %v795_v49 = vrot.slane %v1690_v54, 6 }
 0xb3e   :  { %680 = vrot.lane.b32.xlu2 %v1699_v25, %s1407_s1 }
 0xb41   :  { %v673_v1 = vpop.permute.xlu0 %672 }
 0xb42   :  { %v675_v4 = vmul.f32 %v673_v1, %v653_v19 }
 0xb44   :  { %677 = vrot.lane.b32.xlu1 %v675_v4, %s1408_s18 }
 0xb98   :  { %v681_v47 = vpop.permute.xlu2 %680 }
 0xbb6   :  { %v678_v2 = vpop.permute.xlu1 %677 }
 0xbb7   :  { %v683_v62 = vsel %vm125_vm5, %v678_v2, %v681_v47 }
 0xbb8   :  { %1228 = vmatmul.msk.f32.vlgmr.msra.gmra.mxu1 %vm127_vm6, %v683_v62  ;;  %1229 = vmatmul.msk.f32.vlgmr.msra.gmra.mxu2 %vm127_vm6, %v683_v62 }
 0xc35   :  { %v704_v6 = vpop.f32.mrf.mxu1 }
 0xc36   :  { %v771_v7 = vrot.slane %v704_v6, 6 }
 0xc38   :  { %v773_v56 = vadd.f32 %v771_v7, %v1682_v27 }
 0xc3a   :  { %1321 = vtanh.f32 %v773_v56  ;;  %v1231_v34 = vmul.f32 -1.442695, %v773_v56 }
 0xc3b   :  { %v724_v26 = vpop.f32.mrf.mxu2 }
 0xc3c   :  { %v727_v28 = vadd.f32 %v724_v26, %v1560_v46 }
 0xc3e   :  { %1323 = vtanh.f32 %v727_v28  ;;  %v1230_v36 = vmul.f32 -1.442695, %v727_v28 }
 0xc3f   :  { %1325 = vpow2.f32 %v1231_v34 }
 0xc40   :  { %v1322_v30 = vpop.eup %1321  ;;  %1327 = vpow2.f32 %v1230_v36 }
 0xc41   :  { %799 = vrot.lane.b32.xlu1 %v1322_v30, %s1407_s1 }
 0xc44   :  { %v1324_v32 = vpop.eup %1323 }
 0xc45   :  { %750 = vrot.lane.b32.xlu0 %v1324_v32, %s1407_s1  ;;  %v1326_v29 = vpop.eup %1325 }
 0xc46   :  { %v777_v31 = vadd.f32 1.0, %v1326_v29  ;;  %v1328_v33 = vpop.eup %1327 }
 0xc47   :  { %v731_v35 = vadd.f32 1.0, %v1328_v33 }
 0xc48   :  { %1329 = vrcp.f32 %v777_v31  ;;  %v789_v11 = vand.u32 2147483648, %v777_v31  ;;  %vm783_vm12 = vweird.f32 %v777_v31  ;;  %v787_v12 = vand.u32 2147483647, %v777_v31 }
 0xc49   :  { %1331 = vrcp.f32 %v731_v35  ;;  %v743_v15 = vand.u32 2147483648, %v731_v35  ;;  %vm737_vm0 = vweird.f32 %v731_v35  ;;  %v741_v16 = vand.u32 2147483647, %v731_v35 }
 0xc4a   :  { %v790_v14 = vor.u32 1.1754944e-38, %v789_v11  ;;  %vm788_vm15 = vcmp.eq.f32.partialorder %v787_v12, 8.507059e+37 }
 0xc4b   :  { %v744_v21 = vor.u32 1.1754944e-38, %v743_v15  ;;  %vm742_vm2 = vcmp.eq.f32.partialorder %v741_v16, 8.507059e+37 }
 0xc4e   :  { %v1330_v37 = vpop.eup %1329 }
 0xc4f   :  { %v779_v39 = vmul.f32 %v1330_v37, %v777_v31  ;;  %v1332_v43 = vpop.eup %1331  ;;  %vm784_vm11 = vweird.f32 %v1330_v37 }
 0xc50   :  { %v733_v38 = vmul.f32 %v1332_v43, %v731_v35  ;;  %vm785_vm13 = vmor %vm783_vm12, %vm784_vm11  ;;  %vm738_vm14 = vweird.f32 %v1332_v43 }
 0xc51   :  { %v780_v9 = vsub.f32 1.0, %v779_v39  ;;  %vm739_vm1 = vmor %vm737_vm0, %vm738_vm14 }
 0xc52   :  { %v734_v58 = vsub.f32 1.0, %v733_v38 }
 0xc53   :  { %v781_v3 = vmul.f32 %v1330_v37, %v780_v9 }
 0xc54   :  { %v735_v10 = vmul.f32 %v1332_v43, %v734_v58 }
 0xc55   :  { %v782_v42 = vadd.f32 %v1330_v37, %v781_v3 }
 0xc56   :  { %v736_v13 = vadd.f32 %v1332_v43, %v735_v10 }
 0xc57   :  { %v786_v5 = vsel %vm785_vm13, %v1330_v37, %v782_v42 }
 0xc58   :  { %v791_v18 = vsel %vm788_vm15, %v790_v14, %v786_v5  ;;  %v740_v20 = vsel %vm739_vm1, %v1332_v43, %v736_v13 }
 0xc59   :  { %v745_v23 = vsel %vm742_vm2, %v744_v21, %v740_v20  ;;  %v797_v51 = vmul.f32 %v795_v49, %v791_v18 }
 0xc5a   :  { %v748_v41 = vmul.f32 %v745_v23, %v1695_v60 }
 0xcb3   :  { %v800_v17 = vpop.permute.xlu1 %799 }
 0xcb4   :  { %v802_v19 = vmul.f32 %v800_v17, %v791_v18 }
 0xcb6   :  { %804 = vrot.lane.b32.xlu0 %v802_v19, %s1408_s18 }
 0xcb7   :  { %v751_v22 = vpop.permute.xlu0 %750 }
 0xcb8   :  { %v753_v40 = vmul.f32 %v751_v22, %v745_v23 }
 0xcba   :  { %755 = vrot.lane.b32.xlu2 %v753_v40, %s1408_s18 }
 0xd14   :  { %v756_v44 = vpop.permute.xlu2 %755 }
 0xd15   :  { %v1714_v45 = vadd.f32 %v756_v44, %v748_v41 }
 0xd17   :  { %1333 = vtanh.f32 %v1714_v45 }
 0xd1d   :  { %v1334_v48 = vpop.eup %1333 }
 0xd1e   :  { %761 = vrot.lane.b32.xlu1 %v1334_v48, %s1407_s1 }
 0xd28   :  { %v805_v24 = vpop.permute.xlu0 %804 }
 0xd29   :  { %v1719_v52 = vadd.f32 %v805_v24, %v797_v51 }
 0xd2b   :  { %1335 = vtanh.f32 %v1719_v52  ;;  %v935_v40 = vrot.slane %v1719_v52, 6 }
 0xd31   :  { %v1336_v53 = vpop.eup %1335 }
 0xd32   :  { %810 = vrot.lane.b32.xlu2 %v1336_v53, %s1407_s1 }
 0xd8c   :  { %v811_v55 = vpop.permute.xlu2 %810 }
 0xd8d   :  { %v813_v57 = vmul.f32 %v811_v55, %v791_v18 }
 0xd8f   :  { %815 = vrot.lane.b32.xlu0 %v813_v57, %s1408_s18 }
 0xd90   :  { %v762_v59 = vpop.permute.xlu1 %761 }
 0xd91   :  { %v1724_v60 = vmul.f32 %v762_v59, %v745_v23 }
 0xd93   :  { %v818_v61 = vrot.slane %v1724_v60, 6 }
 0xd95   :  { %819 = vrot.lane.b32.xlu1 %v818_v61, %s1407_s1 }
 0xe01   :  { %v816_v54 = vpop.permute.xlu0 %815 }
 0xe07   :  { %v820_v63 = vpop.permute.xlu1 %819 }
 0xe08   :  { %v822_v1 = vsel %vm125_vm5, %v816_v54, %v820_v63 }
 0xe09   :  { %v824_v4 = vrot.slane %v822_v1, 2 }
 0xe0b   :  { %1232 = vmatmul.msk.f32.vlgmr.msra.gmra.mxu3 %vm127_vm6, %v824_v4  ;;  %1233 = vmatmul.msk.f32.vlgmr.msrb.gmra.mxu0 %vm127_vm6, %v824_v4 }
 0xe88   :  { %v864_v47 = vpop.f32.mrf.mxu0 }
 0xe89   :  { %v867_v2 = vadd.f32 %v864_v47, %v1560_v46 }
 0xe8b   :  { %1337 = vtanh.f32 %v867_v2  ;;  %v1234_v28 = vmul.f32 -1.442695, %v867_v2  ;;  %v1756_v2 = vld [vmem:[#allocation3 + $0xe8] ss:$0 sm:$0xff] }
 0xe8e   :  { %v844_v62 = vpop.f32.mrf.mxu3 }
 0xe8f   :  { %v911_v6 = vrot.slane %v844_v62, 4 }
 0xe91   :  { %v1338_v7 = vpop.eup %1337  ;;  %v913_v56 = vadd.f32 %v911_v6, %v1682_v27 }
 0xe92   :  { %890 = vrot.lane.b32.xlu2 %v1338_v7, %s1407_s1 }
 0xe93   :  { %1339 = vtanh.f32 %v913_v56  ;;  %v1235_v29 = vmul.f32 -1.442695, %v913_v56 }
 0xe94   :  { %1341 = vpow2.f32 %v1234_v28 }
 0xe99   :  { %v1340_v26 = vpop.eup %1339 }
 0xe9a   :  { %939 = vrot.lane.b32.xlu0 %v1340_v26, %s1407_s1  ;;  %v1342_v30 = vpop.eup %1341 }
 0xe9b   :  { %v871_v32 = vadd.f32 1.0, %v1342_v30 }
 0xe9d   :  { %1343 = vrcp.f32 %v871_v32  ;;  %v883_v35 = vand.u32 2147483648, %v871_v32  ;;  %vm877_vm4 = vweird.f32 %v871_v32  ;;  %v881_v37 = vand.u32 2147483647, %v871_v32 }
 0xe9e   :  { %1345 = vpow2.f32 %v1235_v29 }
 0xe9f   :  { %v884_v9 = vor.u32 1.1754944e-38, %v883_v35  ;;  %vm882_vm8 = vcmp.eq.f32.partialorder %v881_v37, 8.507059e+37 }
 0xea3   :  { %v1344_v34 = vpop.eup %1343 }
 0xea4   :  { %v873_v36 = vmul.f32 %v1344_v34, %v871_v32  ;;  %vm878_vm3 = vweird.f32 %v1344_v34  ;;  %v1346_v39 = vpop.eup %1345 }
 0xea5   :  { %vm879_vm7 = vmor %vm877_vm4, %vm878_vm3  ;;  %v917_v38 = vadd.f32 1.0, %v1346_v39 }
 0xea6   :  { %v874_v46 = vsub.f32 1.0, %v873_v36 }
 0xea7   :  { %1347 = vrcp.f32 %v917_v38  ;;  %v929_v14 = vand.u32 2147483648, %v917_v38  ;;  %vm923_vm10 = vweird.f32 %v917_v38  ;;  %v927_v15 = vand.u32 2147483647, %v917_v38 }
 0xea8   :  { %v875_v31 = vmul.f32 %v1344_v34, %v874_v46 }
 0xea9   :  { %v930_v17 = vor.u32 1.1754944e-38, %v929_v14  ;;  %vm928_vm12 = vcmp.eq.f32.partialorder %v927_v15, 8.507059e+37 }
 0xeaa   :  { %v876_v33 = vadd.f32 %v1344_v34, %v875_v31 }
 0xeac   :  { %v880_v43 = vsel %vm879_vm7, %v1344_v34, %v876_v33 }
 0xead   :  { %v885_v58 = vsel %vm882_vm8, %v884_v9, %v880_v43  ;;  %v1348_v10 = vpop.eup %1347 }
 0xeae   :  { %v919_v11 = vmul.f32 %v1348_v10, %v917_v38  ;;  %vm924_vm9 = vweird.f32 %v1348_v10  ;;  %v888_v21 = vmul.f32 %v885_v58, %v1714_v45 }
 0xeaf   :  { %vm925_vm11 = vmor %vm923_vm10, %vm924_vm9  ;;  %vm213_vm10 = vcmask 254976  }
 0xeb0   :  { %v920_v12 = vsub.f32 1.0, %v919_v11 }
 0xeb2   :  { %v921_v5 = vmul.f32 %v1348_v10, %v920_v12 }
 0xeb4   :  { %v922_v13 = vadd.f32 %v1348_v10, %v921_v5 }
 0xeb6   :  { %v926_v16 = vsel %vm925_vm11, %v1348_v10, %v922_v13  ;;  %vm1201_vm11 = vcmask 31744  }
 0xeb7   :  { %v931_v19 = vsel %vm928_vm12, %v930_v17, %v926_v16 }
 0xeb8   :  { %v937_v41 = vmul.f32 %v935_v40, %v931_v19 }
 0xeec   :  { %v891_v3 = vpop.permute.xlu2 %890 }
 0xeed   :  { %v893_v42 = vmul.f32 %v891_v3, %v885_v58 }
 0xeef   :  { %895 = vrot.lane.b32.xlu1 %v893_v42, %s1408_s18 }
 0xf0c   :  { %v940_v18 = vpop.permute.xlu0 %939 }
 0xf0d   :  { %v942_v20 = vmul.f32 %v940_v18, %v931_v19 }
 0xf0f   :  { %944 = vrot.lane.b32.xlu2 %v942_v20, %s1408_s18 }
 0xf61   :  { %v896_v22 = vpop.permute.xlu1 %895 }
 0xf62   :  { %v1738_v23 = vadd.f32 %v896_v22, %v888_v21 }
 0xf64   :  { %1349 = vtanh.f32 %v1738_v23 }
 0xf69   :  { %v945_v44 = vpop.permute.xlu2 %944 }
 0xf6a   :  { %v1350_v48 = vpop.eup %1349  ;;  %v1742_v49 = vadd.f32 %v945_v44, %v937_v41 }
 0xf6b   :  { %901 = vrot.lane.b32.xlu0 %v1350_v48, %s1407_s1 }
 0xf6c   :  { %1351 = vtanh.f32 %v1742_v49  ;;  %v1075_v18 = vrot.slane %v1742_v49, 6 }
 0xf72   :  { %v1352_v51 = vpop.eup %1351 }
 0xf73   :  { %950 = vrot.lane.b32.xlu1 %v1352_v51, %s1407_s1 }
 0xfdd   :  { %v902_v45 = vpop.permute.xlu0 %901 }
 0xfde   :  { %v1747_v24 = vmul.f32 %v902_v45, %v885_v58 }
 0xfe0   :  { %v958_v53 = vrot.slane %v1747_v24, 4 }
 0xfe2   :  { %959 = vrot.lane.b32.xlu0 %v958_v53, %s1407_s1 }
 0xfe5   :  { %v951_v52 = vpop.permute.xlu1 %950 }
 0xfe6   :  { %v953_v55 = vmul.f32 %v951_v52, %v931_v19 }
 0xfe8   :  { %955 = vrot.lane.b32.xlu2 %v953_v55, %s1408_s18 }
0x1042   :  { %v956_v57 = vpop.permute.xlu2 %955 }
0x1054   :  { %v960_v59 = vpop.permute.xlu0 %959 }
0x1055   :  { %v962_v61 = vsel %vm125_vm5, %v956_v57, %v960_v59 }
0x1056   :  { %v964_v54 = vrot.slane %v962_v61, 4 }
0x1058   :  { %1236 = vmatmul.msk.f32.vlgmr.msrb.gmra.mxu1 %vm127_vm6, %v964_v54  ;;  %1237 = vmatmul.msk.f32.vlgmr.msrb.gmra.mxu2 %vm127_vm6, %v964_v54 }
0x10d5   :  { %v984_v63 = vpop.f32.mrf.mxu1 }
0x10d6   :  { %v1051_v1 = vrot.slane %v984_v63, 2 }
0x10d8   :  { %v1053_v4 = vadd.f32 %v1051_v1, %v1682_v27 }
0x10da   :  { %1353 = vtanh.f32 %v1053_v4  ;;  %v1239_v56 = vmul.f32 -1.442695, %v1053_v4 }
0x10db   :  { %v1004_v47 = vpop.f32.mrf.mxu2 }
0x10dc   :  { %v1007_v62 = vadd.f32 %v1756_v2, %v1004_v47 }
0x10de   :  { %1355 = vtanh.f32 %v1007_v62  ;;  %v1238_v32 = vmul.f32 -1.442695, %v1007_v62 }
0x10df   :  { %1357 = vpow2.f32 %v1239_v56 }
0x10e0   :  { %v1354_v6 = vpop.eup %1353 }
0x10e1   :  { %1079 = vrot.lane.b32.xlu2 %v1354_v6, %s1407_s1 }
0x10e4   :  { %v1356_v7 = vpop.eup %1355 }
0x10e5   :  { %1030 = vrot.lane.b32.xlu1 %v1356_v7, %s1407_s1  ;;  %v1358_v26 = vpop.eup %1357 }
0x10e6   :  { %v1057_v28 = vadd.f32 1.0, %v1358_v26 }
0x10e8   :  { %1359 = vrcp.f32 %v1057_v28  ;;  %v1069_v31 = vand.u32 2147483648, %v1057_v28  ;;  %vm1063_vm14 = vweird.f32 %v1057_v28  ;;  %v1067_v33 = vand.u32 2147483647, %v1057_v28 }
0x10e9   :  { %1361 = vpow2.f32 %v1238_v32 }
0x10ea   :  { %v1070_v39 = vor.u32 1.1754944e-38, %v1069_v31  ;;  %vm1068_vm0 = vcmp.eq.f32.partialorder %v1067_v33, 8.507059e+37 }
0x10ee   :  { %v1360_v30 = vpop.eup %1359 }
0x10ef   :  { %v1059_v27 = vmul.f32 %v1360_v30, %v1057_v28  ;;  %v1362_v46 = vpop.eup %1361  ;;  %vm1064_vm13 = vweird.f32 %v1360_v30 }
0x10f0   :  { %v1011_v35 = vadd.f32 1.0, %v1362_v46  ;;  %vm1065_vm15 = vmor %vm1063_vm14, %vm1064_vm13 }
0x10f1   :  { %v1060_v34 = vsub.f32 1.0, %v1059_v27 }
0x10f2   :  { %1363 = vrcp.f32 %v1011_v35  ;;  %v1023_v12 = vand.u32 2147483648, %v1011_v35  ;;  %vm1017_vm2 = vweird.f32 %v1011_v35  ;;  %v1021_v5 = vand.u32 2147483647, %v1011_v35 }
0x10f3   :  { %v1061_v36 = vmul.f32 %v1360_v30, %v1060_v34 }
0x10f4   :  { %v1024_v14 = vor.u32 1.1754944e-38, %v1023_v12  ;;  %vm1022_vm4 = vcmp.eq.f32.partialorder %v1021_v5, 8.507059e+37 }
0x10f5   :  { %v1062_v29 = vadd.f32 %v1360_v30, %v1061_v36 }
0x10f7   :  { %v1066_v37 = vsel %vm1065_vm15, %v1360_v30, %v1062_v29 }
0x10f8   :  { %v1071_v9 = vsel %vm1068_vm0, %v1070_v39, %v1066_v37  ;;  %v1364_v3 = vpop.eup %1363  ;;  %v47_v39 = vld [vmem:[#allocation3 + $0xc0] sm:$0xff] }
0x10f9   :  { %v1013_v58 = vmul.f32 %v1364_v3, %v1011_v35  ;;  %vm1018_vm1 = vweird.f32 %v1364_v3  ;;  %v1077_v19 = vmul.f32 %v1075_v18, %v1071_v9 }
0x10fa   :  { %vm1019_vm3 = vmor %vm1017_vm2, %vm1018_vm1 }
0x10fb   :  { %v1014_v42 = vsub.f32 1.0, %v1013_v58 }
0x10fd   :  { %v1015_v10 = vmul.f32 %v1364_v3, %v1014_v42 }
0x10ff   :  { %v1016_v11 = vadd.f32 %v1364_v3, %v1015_v10 }
0x1101   :  { %v1020_v13 = vsel %vm1019_vm3, %v1364_v3, %v1016_v11  ;;  %v51_v11 = vld [vmem:[#allocation3 + $0xe1] ss:$0 sm:$0xff] }
0x1102   :  { %v1025_v16 = vsel %vm1022_vm4, %v1024_v14, %v1020_v13 }
0x1103   :  { %v1028_v40 = vmul.f32 %v1025_v16, %v1738_v23 }
0x113b   :  { %v1080_v43 = vpop.permute.xlu2 %1079 }
0x113c   :  { %v1082_v38 = vmul.f32 %v1080_v43, %v1071_v9  ;;  %v46_v43 = vld [vmem:[#allocation3 + $0xb0] sm:$0xff] }
0x113e   :  { %1084 = vrot.lane.b32.xlu1 %v1082_v38, %s1408_s18 }
0x1157   :  { %v1031_v15 = vpop.permute.xlu1 %1030 }
0x1158   :  { %v1033_v17 = vmul.f32 %v1031_v15, %v1025_v16 }
0x115a   :  { %1035 = vrot.lane.b32.xlu0 %v1033_v17, %s1408_s18 }
0x11b0   :  { %v1085_v20 = vpop.permute.xlu1 %1084 }
0x11b1   :  { %v1087_v21 = vadd.f32 %v1085_v20, %v1077_v19 }
0x11b3   :  { %1365 = vtanh.f32 %v1087_v21 }
0x11b9   :  { %v1366_v22 = vpop.eup %1365 }
0x11ba   :  { %1090 = vrot.lane.b32.xlu0 %v1366_v22, %s1407_s1 }
0x11cc   :  { %v1036_v41 = vpop.permute.xlu0 %1035 }
0x11cd   :  { %v1038_v44 = vadd.f32 %v1036_v41, %v1028_v40 }
0x11cf   :  { %1367 = vtanh.f32 %v1038_v44 }
0x11d5   :  { %v1368_v48 = vpop.eup %1367 }
0x11d6   :  { %1041 = vrot.lane.b32.xlu2 %v1368_v48, %s1407_s1 }
0x122c   :  { %v1091_v51 = vpop.permute.xlu0 %1090 }
0x122d   :  { %v1093_v45 = vmul.f32 %v1091_v51, %v1071_v9  ;;  %v45_v9 = vld [vmem:[#allocation3 + $0xa0] sm:$0xff] }
0x122f   :  { %1095 = vrot.lane.b32.xlu1 %v1093_v45, %s1408_s18 }
0x1230   :  { %v1042_v49 = vpop.permute.xlu2 %1041 }
0x1231   :  { %v1044_v53 = vmul.f32 %v1042_v49, %v1025_v16 }
0x1233   :  { %v1098_v52 = vrot.slane %v1044_v53, 2 }
0x1235   :  { %1099 = vrot.lane.b32.xlu2 %v1098_v52, %s1407_s1 }
0x128f   :  { %v1100_v55 = vpop.permute.xlu2 %1099 }
0x12a1   :  { %v1096_v57 = vpop.permute.xlu1 %1095 }
0x12a2   :  { %v1102_v59 = vsel %vm125_vm5, %v1096_v57, %v1100_v55 }
0x12a3   :  { %v1104_v23 = vrot.slane %v1102_v59, 6 }
0x12a5   :  { %1240 = vmatmul.msk.f32.vlgmr.msrb.gmra.mxu3 %vm127_vm6, %v1104_v23 }
0x1328   :  { %v1124_v61 = vpop.f32.mrf.mxu3 }
0x1329   :  { %v1127_v54 = vadd.f32 %v1756_v2, %v1124_v61 }
0x132b   :  { %1369 = vtanh.f32 %v1127_v54  ;;  %v1241_v1 = vmul.f32 -1.442695, %v1127_v54 }
0x132d   :  { %1371 = vpow2.f32 %v1241_v1 }
0x1331   :  { %v1370_v63 = vpop.eup %1369 }
0x1332   :  { %1150 = vrot.lane.b32.xlu0 %v1370_v63, %s1407_s1 }
0x1333   :  { %v1372_v4 = vpop.eup %1371 }
0x1334   :  { %v1131_v47 = vadd.f32 1.0, %v1372_v4 }
0x1336   :  { %1373 = vrcp.f32 %v1131_v47  ;;  %v1143_v26 = vand.u32 2147483648, %v1131_v47  ;;  %vm1137_vm7 = vweird.f32 %v1131_v47  ;;  %v1141_v28 = vand.u32 2147483647, %v1131_v47 }
0x1338   :  { %v1144_v30 = vor.u32 1.1754944e-38, %v1143_v26  ;;  %vm1142_vm9 = vcmp.eq.f32.partialorder %v1141_v28, 8.507059e+37 }
0x133a   :  { %210 = vrot.lane.b32.xlu0 %v1577_v50, %s1408_s18 }
0x133c   :  { %v1374_v62 = vpop.eup %1373 }
0x133d   :  { %v1133_v6 = vmul.f32 %v1374_v62, %v1131_v47  ;;  %vm1138_vm6 = vweird.f32 %v1374_v62 }
0x133e   :  { %vm1139_vm8 = vmor %vm1137_vm7, %vm1138_vm6 }
0x133f   :  { %v1134_v2 = vsub.f32 1.0, %v1133_v6 }
0x1341   :  { %v1135_v7 = vmul.f32 %v1374_v62, %v1134_v2 }
0x1342   :  { %631 = vrot.lane.b32.xlu0 %v1699_v25, %s1408_s18 }
0x1343   :  { %v1136_v56 = vadd.f32 %v1374_v62, %v1135_v7 }
0x1345   :  { %v1140_v50 = vsel %vm1139_vm8, %v1374_v62, %v1136_v56 }
0x1346   :  { %v1145_v27 = vsel %vm1142_vm9, %v1144_v30, %v1140_v50 }
0x1347   :  { %v1148_v29 = vmul.f32 %v1145_v27, %v1038_v44 }
0x134a   :  { %1046 = vrot.lane.b32.xlu0 %v1044_v53, %s1408_s18 }
0x13a4   :  { %v1151_v25 = vpop.permute.xlu0 %1150 }
0x13a5   :  { %v1153_v32 = vmul.f32 %v1151_v25, %v1145_v27 }
0x13a7   :  { %1155 = vrot.lane.b32.xlu1 %v1153_v32, %s1408_s18 }
0x13ac   :  { %v211_v34 = vpop.permute.xlu0 %210 }
0x13ad   :  { %214 = vst.msk [vmem:[#allocation2] sm:$0x3] %vm213_vm10, %v211_v34 }
0x13af   :  { %351 = vrot.lane.b32.xlu1 %v1623_v0, %s1408_s18 }
0x13b4   :  { %v632_v36 = vpop.permute.xlu0 %631 }
0x13b5   :  { %634 = vst.msk [vmem:[#allocation2 + $0x6] sm:$0x3] %vm213_vm10, %v632_v36 }
0x13b7   :  { %766 = vrot.lane.b32.xlu1 %v1724_v60, %s1408_s18  ;;  %v48_v60 = vld [vmem:[#allocation3 + $0xd0] sm:$0xff] }
0x13b8   :  { %1190 = vmatpush.msra.mxu0 %v48_v60 }
0x13ba   :  { %1191 = vmatpush.msra.mxu0 %v47_v39 }
0x13bc   :  { %v1047_v46 = vpop.permute.xlu0 %1046  ;;  %1192 = vmatpush.msra.mxu0 %v46_v43 }
0x13bd   :  { %1049 = vst.msk [vmem:[#allocation2 + $0xc] sm:$0x3] %vm213_vm10, %v1047_v46 }
0x13be   :  { %1193 = vmatpush.msra.mxu0 %v45_v9 }
0x1419   :  { %v1156_v31 = vpop.permute.xlu1 %1155 }
0x141a   :  { %v1158_v33 = vadd.f32 %v1156_v31, %v1148_v29 }
0x141c   :  { %1375 = vtanh.f32 %v1158_v33 }
0x1421   :  { %v352_v35 = vpop.permute.xlu1 %351 }
0x1422   :  { %v1376_v37 = vpop.eup %1375  ;;  %354 = vst.msk [vmem:[#allocation2 + $0x2] sm:$0x3] %vm213_vm10, %v352_v35 }
0x1423   :  { %1161 = vrot.lane.b32.xlu2 %v1376_v37, %s1407_s1 }
0x1429   :  { %v767_v0 = vpop.permute.xlu1 %766 }
0x142a   :  { %769 = vst.msk [vmem:[#allocation2 + $0x8] sm:$0x3] %vm213_vm10, %v767_v0 }
0x142b   :  { %491 = vrot.lane.b32.xlu2 %v1664_v8, %s1408_s18 }
0x1433   :  { %906 = vrot.lane.b32.xlu2 %v1747_v24, %s1408_s18 }
0x147d   :  { %v1162_v38 = vpop.permute.xlu2 %1161 }
0x147e   :  { %v1164_v3 = vmul.f32 %v1162_v38, %v1145_v27 }
0x1480   :  { %1166 = vrot.lane.b32.xlu1 %v1164_v3, %s1408_s18 }
0x1485   :  { %v492_v58 = vpop.permute.xlu2 %491 }
0x1486   :  { %494 = vst.msk [vmem:[#allocation2 + $0x4] sm:$0x3] %vm213_vm10, %v492_v58 }
0x148d   :  { %v907_v42 = vpop.permute.xlu2 %906  ;;  %v1170_v8 = vld [vmem:[#allocation2] sm:$0xff] }
0x148e   :  { %909 = vst.msk [vmem:[#allocation2 + $0xa] sm:$0x3] %vm213_vm10, %v907_v42  ;;  %1242 = vmatmul.msk.f32.vlgmr.msra.gmra.mxu0 %vm125_vm5, %v1170_v8 }
0x14f2   :  { %v1167_v24 = vpop.permute.xlu1 %1166 }
0x14f3   :  { %1169 = vst.msk [vmem:[#allocation2 + $0xe] sm:$0x3] %vm213_vm10, %v1167_v24 }
0x14fa   :  { %v1171_v10 = vld [vmem:[#allocation2 + $0x8] sm:$0xff] }
0x14fb   :  { %1243 = vmatmul.msk.f32.gmra.mxu0 %vm125_vm5, %v1171_v10 }
0x150b   :  { %v1195_v12 = vpop.f32.mrf.mxu0 }
0x150c   :  { %v1196_v5 = vadd.f32 %v1195_v12, %v51_v11 }
0x150e   :  { %1202 = vst.msk [vmem:[%s1807_s2] sm:$0xff] %vm1201_vm11, %v1196_v5 }
0x1578   :  { %v1198_v13 = vpop.f32.mrf.mxu0 }
0x1579   :  { %v1199_v14 = vadd.f32 %v1198_v13, %v51_v11 }
0x157b   :  { %1203 = vst.msk [vmem:[%s1807_s2 + $0x8] sm:$0xff] %vm1201_vm11, %v1199_v14 }
0x157c   :  { %1208 = vsyncpa [#allocation4], 1 }

</bundles_post_ra>
